<compile_context>
chip_gen: v5e
topology: v5e:2x2
jax: 0.10.0
libtpu: 0.0.40
codegen_flags: <defaults>
</compile_context>

<pallas_src>
import functools

import jax
import jax.numpy as jnp
from jax import lax
from jax.experimental import pallas as pl
from jax.experimental.pallas import tpu as pltpu

LANE = 128  # channel dims / num_classes are zero-padded to a multiple of this


def _round_up(n, m):
    return ((n + m - 1) // m) * m


def _pad_axis(a, axis, target):
    if a.shape[axis] == target:
        return a
    widths = [(0, 0)] * a.ndim
    widths[axis] = (0, target - a.shape[axis])
    return jnp.pad(a, widths)


# ---------------------------------------------------------------------------
# Kernel
# ---------------------------------------------------------------------------

def _causal_pad(h, pad):
    """Left-pad the time axis of a (TB, T, C) value with `pad` zero rows."""
    if pad == 0:
        return h
    TB, _, C = h.shape
    return jnp.concatenate([jnp.zeros((TB, pad, C), h.dtype), h], axis=1)


def _temporal_block(h, w1_ref, b1_ref, w2_ref, b2_ref, wd_ref, bd_ref, *,
                    K, dilation):
    """One fused TemporalBlock on a (TB, T, Cin) value -> (TB, T, Cout).

    conv1 (dilated causal) + chomp + ReLU, conv2 + chomp + ReLU, residual
    (identity or 1x1 downsample, fused into conv1's shift-0 tap via N-concat),
    final ReLU. Everything stays in VMEM / vregs; nothing touches HBM.
    """
    TB, T, Cin = h.shape
    Cout = w1_ref.shape[2]
    cdtype = h.dtype
    pad = (K - 1) * dilation
    M = TB * T

    # ---- conv1 (+ fused 1x1 downsample residual on the shift-0 tap) --------
    hp = _causal_pad(h, pad)                                # (TB, T+pad, Cin)
    acc = jnp.zeros((M, Cout), jnp.float32)
    res = None
    for j in range(K):                           # tap j -> shift (K-1-j)*dil
        xs = hp[:, j * dilation:j * dilation + T, :].reshape(M, Cin)
        w = w1_ref[j]                                       # (Cin, Cout)
        if j == K - 1 and wd_ref is not None:
            # One (M, Cin) @ (Cin, 2*Cout) MXU pass computes the last conv tap
            # and the 1x1 residual conv together (fills N=256 on v6e/v7x).
            w = jnp.concatenate([w, wd_ref[...]], axis=1)
        d = jnp.dot(xs, w, preferred_element_type=jnp.float32)
        if j == K - 1 and wd_ref is not None:
            res = d[:, Cout:] + bd_ref[...]
            d = d[:, :Cout]
        acc = acc + d
    if res is None:                              # identity residual (Cin==Cout)
        res = h.reshape(M, Cin).astype(jnp.float32)
    y = jnp.maximum(acc + b1_ref[...], 0.0).astype(cdtype)   # chomp + ReLU

    # ---- conv2 --------------------------------------------------------------
    yp = _causal_pad(y.reshape(TB, T, Cout), pad)
    acc2 = jnp.zeros((M, Cout), jnp.float32)
    for j in range(K):
        ys = yp[:, j * dilation:j * dilation + T, :].reshape(M, Cout)
        acc2 = acc2 + jnp.dot(ys, w2_ref[j],
                              preferred_element_type=jnp.float32)
    z = jnp.maximum(acc2 + b2_ref[...], 0.0)                  # chomp + ReLU

    out = jnp.maximum(z + res, 0.0)                # residual add + final ReLU
    return out.astype(cdtype).reshape(TB, T, Cout)


def _tcn_kernel(*refs, has_down, K, T, TB, n_blocks):
    """Whole TCN (trunk + masked temporal mean + Linear) for one batch tile."""
    len_ref = refs[0]               # (B_pad,) int32 in SMEM (scalar prefetch)
    x_ref = refs[1]                 # (TB, T, Cin_p)
    idx = 2
    blk_refs = []
    for i in range(n_blocks):
        n = 6 if has_down[i] else 4
        blk_refs.append(refs[idx:idx + n])
        idx += n
    fcw_ref, fcb_ref = refs[idx], refs[idx + 1]
    out_ref = refs[idx + 2]         # (TB, 1, NCLS_p)

    h = x_ref[...]
    for i in range(n_blocks):
        if has_down[i]:
            w1, b1, w2, b2, wd, bd = blk_refs[i]
        else:
            w1, b1, w2, b2 = blk_refs[i]
            wd = bd = None
        h = _temporal_block(h, w1, b1, w2, b2, wd, bd, K=K, dilation=2 ** i)

    # _average_batch: per-sample mean over t in [0, lengths[b]) — the
    # (TB, T, C_last) activation is consumed here and never reaches HBM.
    b0 = pl.program_id(0) * TB
    t_idx = lax.broadcasted_iota(jnp.int32, (T, 1), 0)
    rows = []
    for i in range(TB):
        ln = jnp.maximum(len_ref[b0 + i], 1)              # guard zero lengths
        m = (t_idx < ln).astype(jnp.float32)              # (T, 1)
        hi = h[i].astype(jnp.float32)                     # (T, C_last_p)
        rows.append(jnp.sum(hi * m, axis=0, keepdims=True)
                    / ln.astype(jnp.float32))             # (1, C_last_p)
    avg = jnp.concatenate(rows, axis=0) if TB > 1 else rows[0]   # (TB, C)

    logits = jnp.dot(avg, fcw_ref[...], preferred_element_type=jnp.float32)
    logits = logits + fcb_ref[...]
    out_ref[...] = logits.reshape(TB, 1, logits.shape[-1]).astype(out_ref.dtype)


# ---------------------------------------------------------------------------
# One-time weight preparation + forward wrapper
# ---------------------------------------------------------------------------

def prepare_tcn_params(params, *, compute_dtype=jnp.bfloat16):
    """Lane-pad, reshape and cast all weights ONCE (keep out of the per-call
    path). Biases stay float32; matmul weights take `compute_dtype`."""
    K = params["blocks"][0]["w1"].shape[0]
    cin0 = params["blocks"][0]["w1"].shape[1]
    blocks, has_down = [], []
    for blk in params["blocks"]:
        _, cin, cout = blk["w1"].shape
        cin_p, cout_p = _round_up(cin, LANE), _round_up(cout, LANE)
        b = {
            "w1": _pad_axis(_pad_axis(blk["w1"], 1, cin_p), 2,
                            cout_p).astype(compute_dtype),
            "b1": _pad_axis(blk["b1"], 0, cout_p).reshape(1, cout_p)
                  .astype(jnp.float32),
            "w2": _pad_axis(_pad_axis(blk["w2"], 1, cout_p), 2,
                            cout_p).astype(compute_dtype),
            "b2": _pad_axis(blk["b2"], 0, cout_p).reshape(1, cout_p)
                  .astype(jnp.float32),
        }
        if "wd" in blk:  # 1x1 downsample conv on the residual path
            b["wd"] = _pad_axis(_pad_axis(blk["wd"][0], 0, cin_p), 1,
                                cout_p).astype(compute_dtype)
            b["bd"] = _pad_axis(blk["bd"], 0, cout_p).reshape(1, cout_p)\
                      .astype(jnp.float32)
        blocks.append(b)
        has_down.append("wd" in blk)
    c_last, ncls = params["fc_w"].shape
    c_last_p, ncls_p = _round_up(c_last, LANE), _round_up(ncls, LANE)
    fc_w = _pad_axis(_pad_axis(params["fc_w"], 0, c_last_p), 1,
                     ncls_p).astype(jnp.float32)
    fc_b = _pad_axis(params["fc_b"], 0, ncls_p).reshape(1, ncls_p)\
           .astype(jnp.float32)
    return {
        "blocks": blocks, "fc_w": fc_w, "fc_b": fc_b,
        "meta": dict(K=K, has_down=tuple(has_down), cin=cin0,
                     cin_p=_round_up(cin0, LANE), num_classes=ncls,
                     compute_dtype=compute_dtype),
    }


def tcn_forward(prepared, x, lengths):
    """x: (B, T, input_size) f32, lengths: (B,) int -> logits (B, num_classes).

    The PyTorch `.transpose(1, 2)` is absorbed by the channels-last layout.
    """
    meta = prepared["meta"]
    K, has_down = meta["K"], meta["has_down"]
    n_blocks = len(prepared["blocks"])
    if n_blocks < 1:
        raise ValueError("TCN needs at least one TemporalBlock")
    cdtype = meta["compute_dtype"]
    B, T, _ = x.shape
    cin_p = meta["cin_p"]
    ncls_p = prepared["fc_w"].shape[1]

    # Batch tile: fill the MXU M dimension (~256 rows) but keep >=2 grid
    # steps when B >= 2 so "parallel" can split across v7x's two TensorCores.
    tb = max(1, -(-256 // T))
    if B >= 2:
        tb = min(tb, max(1, B // 2))
    tb = min(tb, B)
    b_pad = _round_up(B, tb)

    # Pad input channels / batch once; padded channels stay exactly zero
    # through every block (zero weights / zero bias), so results are exact.
    xp = _pad_axis(_pad_axis(x, 2, cin_p), 0, b_pad).astype(cdtype)
    lens = _pad_axis(lengths.astype(jnp.int32), 0, b_pad)

    def full3(shape):
        return pl.BlockSpec(shape, lambda b, L: (0, 0, 0))

    def full2(shape):
        return pl.BlockSpec(shape, lambda b, L: (0, 0))

    in_specs = [pl.BlockSpec((tb, T, cin_p), lambda b, L: (b, 0, 0))]
    args = [xp]
    for blk, hd in zip(prepared["blocks"], has_down):
        in_specs += [full3(blk["w1"].shape), full2(blk["b1"].shape),
                     full3(blk["w2"].shape), full2(blk["b2"].shape)]
        args += [blk["w1"], blk["b1"], blk["w2"], blk["b2"]]
        if hd:
            in_specs += [full2(blk["wd"].shape), full2(blk["bd"].shape)]
            args += [blk["wd"], blk["bd"]]
    in_specs += [full2(prepared["fc_w"].shape), full2(prepared["fc_b"].shape)]
    args += [prepared["fc_w"], prepared["fc_b"]]

    grid_spec = pltpu.PrefetchScalarGridSpec(
        num_scalar_prefetch=1,
        grid=(b_pad // tb,),
        in_specs=in_specs,
        out_specs=pl.BlockSpec((tb, 1, ncls_p), lambda b, L: (b, 0, 0)),
    )
    kernel = functools.partial(_tcn_kernel, has_down=has_down, K=K, T=T,
                               TB=tb, n_blocks=n_blocks)
    out = pl.pallas_call(
        kernel,
        out_shape=jax.ShapeDtypeStruct((b_pad, 1, ncls_p), jnp.float32),
        grid_spec=grid_spec,
        compiler_params=pltpu.CompilerParams(
            dimension_semantics=("parallel",),
            vmem_limit_bytes=64 * 1024 * 1024),
    )(lens, *args)
    return out[:B, 0, :meta["num_classes"]]


# ---------------------------------------------------------------------------
# Parameter init + pure-JAX reference for verification
# ---------------------------------------------------------------------------

def init_tcn_params(key, input_size, num_channels, num_classes, kernel_size):
    """Weight layout: w[k, c_in, c_out] (== PyTorch Conv1d weight[c_out, c_in, k])."""
    params = {"blocks": []}
    in_ch = input_size
    for out_ch in num_channels:
        key, k1, k2, k3, k4, k5, k6 = jax.random.split(key, 7)
        blk = {
            "w1": 0.05 * jax.random.normal(k1, (kernel_size, in_ch, out_ch),
                                           jnp.float32),
            "b1": 0.05 * jax.random.normal(k2, (out_ch,), jnp.float32),
            "w2": 0.05 * jax.random.normal(k3, (kernel_size, out_ch, out_ch),
                                           jnp.float32),
            "b2": 0.05 * jax.random.normal(k4, (out_ch,), jnp.float32),
        }
        if in_ch != out_ch:  # 1x1 downsample conv on the residual path
            blk["wd"] = 0.05 * jax.random.normal(k5, (1, in_ch, out_ch),
                                                 jnp.float32)
            blk["bd"] = 0.05 * jax.random.normal(k6, (out_ch,), jnp.float32)
        params["blocks"].append(blk)
        in_ch = out_ch
    key, k1, k2 = jax.random.split(key, 3)
    params["fc_w"] = 0.05 * jax.random.normal(k1, (in_ch, num_classes),
                                              jnp.float32)
    params["fc_b"] = 0.05 * jax.random.normal(k2, (num_classes,), jnp.float32)
    return params


def _ref_conv(x, w, b, dil):
    B, T, _ = x.shape
    K = w.shape[0]
    pad = (K - 1) * dil
    xp = jnp.pad(x, ((0, 0), (pad, 0), (0, 0)))
    acc = jnp.zeros((B, T, w.shape[2]), jnp.float32) + b
    for j in range(K):
        acc += jnp.einsum("btc,cd->btd", xp[:, j * dil:j * dil + T, :], w[j])
    return acc


def ref_forward(params, x, lengths):
    h = x
    for i, blk in enumerate(params["blocks"]):
        dil = 2 ** i
        res = _ref_conv(h, blk["wd"], blk["bd"], 1) if "wd" in blk else h
        y = jnp.maximum(_ref_conv(h, blk["w1"], blk["b1"], dil), 0.0)
        z = jnp.maximum(_ref_conv(y, blk["w2"], blk["b2"], dil), 0.0)
        h = jnp.maximum(z + res, 0.0)
    T = h.shape[1]
    mask = (jnp.arange(T)[None, :, None] < lengths[:, None, None]).astype(
        jnp.float32)
    avg = jnp.sum(h * mask, axis=1) / lengths[:, None].astype(jnp.float32)
    return avg @ params["fc_w"] + params["fc_b"]


# ---------------------------------------------------------------------------

if __name__ == "__main__":
    B, T = 2, 16
    input_size = 24
    num_channels = [32, 32, 48]   # exercises downsample + identity residuals
    num_classes = 10
    kernel_size = 3

    key = jax.random.PRNGKey(0)
    k_x, k_p = jax.random.split(key)
    x = jax.random.normal(k_x, (B, T, input_size), jnp.float32)
    lengths = jnp.array([16, 11], dtype=jnp.int32)

    params = init_tcn_params(k_p, input_size, num_channels, num_classes,
                             kernel_size)
    ref = jax.block_until_ready(ref_forward(params, x, lengths))

    # Exact float32 compute path.
    prep32 = prepare_tcn_params(params, compute_dtype=jnp.float32)
    out32 = jax.block_until_ready(tcn_forward(prep32, x, lengths))
    assert out32.shape == (B, num_classes)
    assert jnp.allclose(out32, ref, rtol=1e-4, atol=1e-4), (out32, ref)

    # Default bfloat16 compute path (f32 accumulation) — loose tolerance.
    prep16 = prepare_tcn_params(params)
    out16 = jax.block_until_ready(tcn_forward(prep16, x, lengths))
    assert out16.shape == (B, num_classes)
    assert bool(jnp.all(jnp.isfinite(out16)))
    assert jnp.allclose(out16, ref, rtol=1e-1, atol=1e-1), (out16, ref)

    print("KERNEL_OK")
</pallas_src>

<mosaic_0001>
module attributes {stable_mosaic.version = 11 : i64} {
  func.func @_tcn_kernel(%arg0: i32, %arg1: memref<2xi32, #tpu.memory_space<smem>>, %arg2: memref<1x16x128xf32, #tpu.memory_space<vmem>>, %arg3: memref<3x128x128xf32, #tpu.memory_space<vmem>>, %arg4: memref<1x128xf32, #tpu.memory_space<vmem>>, %arg5: memref<3x128x128xf32, #tpu.memory_space<vmem>>, %arg6: memref<1x128xf32, #tpu.memory_space<vmem>>, %arg7: memref<128x128xf32, #tpu.memory_space<vmem>>, %arg8: memref<1x128xf32, #tpu.memory_space<vmem>>, %arg9: memref<3x128x128xf32, #tpu.memory_space<vmem>>, %arg10: memref<1x128xf32, #tpu.memory_space<vmem>>, %arg11: memref<3x128x128xf32, #tpu.memory_space<vmem>>, %arg12: memref<1x128xf32, #tpu.memory_space<vmem>>, %arg13: memref<3x128x128xf32, #tpu.memory_space<vmem>>, %arg14: memref<1x128xf32, #tpu.memory_space<vmem>>, %arg15: memref<3x128x128xf32, #tpu.memory_space<vmem>>, %arg16: memref<1x128xf32, #tpu.memory_space<vmem>>, %arg17: memref<128x128xf32, #tpu.memory_space<vmem>>, %arg18: memref<1x128xf32, #tpu.memory_space<vmem>>, %arg19: memref<128x128xf32, #tpu.memory_space<vmem>>, %arg20: memref<1x128xf32, #tpu.memory_space<vmem>>, %arg21: memref<1x1x128xf32, #tpu.memory_space<vmem>>) attributes {dimension_semantics = [#tpu.dimension_semantics<parallel>], iteration_bounds = array<i64: 2>, scalar_prefetch = 1 : i64, scratch_operands = 0 : i64, tpu.core_type = #tpu.core_type<tc>, window_params = [{transform_indices = @transform_0, window_bounds = array<i64: 1, 16, 128>}, {pipeline_mode = #tpu.pipeline_mode<synchronous>, transform_indices = @transform_1, window_bounds = array<i64: 3, 128, 128>}, {pipeline_mode = #tpu.pipeline_mode<synchronous>, transform_indices = @transform_2, window_bounds = array<i64: 1, 128>}, {pipeline_mode = #tpu.pipeline_mode<synchronous>, transform_indices = @transform_3, window_bounds = array<i64: 3, 128, 128>}, {pipeline_mode = #tpu.pipeline_mode<synchronous>, transform_indices = @transform_4, window_bounds = array<i64: 1, 128>}, {pipeline_mode = #tpu.pipeline_mode<synchronous>, transform_indices = @transform_5, window_bounds = array<i64: 128, 128>}, {pipeline_mode = #tpu.pipeline_mode<synchronous>, transform_indices = @transform_6, window_bounds = array<i64: 1, 128>}, {pipeline_mode = #tpu.pipeline_mode<synchronous>, transform_indices = @transform_7, window_bounds = array<i64: 3, 128, 128>}, {pipeline_mode = #tpu.pipeline_mode<synchronous>, transform_indices = @transform_8, window_bounds = array<i64: 1, 128>}, {pipeline_mode = #tpu.pipeline_mode<synchronous>, transform_indices = @transform_9, window_bounds = array<i64: 3, 128, 128>}, {pipeline_mode = #tpu.pipeline_mode<synchronous>, transform_indices = @transform_10, window_bounds = array<i64: 1, 128>}, {pipeline_mode = #tpu.pipeline_mode<synchronous>, transform_indices = @transform_11, window_bounds = array<i64: 3, 128, 128>}, {pipeline_mode = #tpu.pipeline_mode<synchronous>, transform_indices = @transform_12, window_bounds = array<i64: 1, 128>}, {pipeline_mode = #tpu.pipeline_mode<synchronous>, transform_indices = @transform_13, window_bounds = array<i64: 3, 128, 128>}, {pipeline_mode = #tpu.pipeline_mode<synchronous>, transform_indices = @transform_14, window_bounds = array<i64: 1, 128>}, {pipeline_mode = #tpu.pipeline_mode<synchronous>, transform_indices = @transform_15, window_bounds = array<i64: 128, 128>}, {pipeline_mode = #tpu.pipeline_mode<synchronous>, transform_indices = @transform_16, window_bounds = array<i64: 1, 128>}, {pipeline_mode = #tpu.pipeline_mode<synchronous>, transform_indices = @transform_17, window_bounds = array<i64: 128, 128>}, {pipeline_mode = #tpu.pipeline_mode<synchronous>, transform_indices = @transform_18, window_bounds = array<i64: 1, 128>}, {transform_indices = @transform_19, window_bounds = array<i64: 1, 1, 128>}]} {
    %c0 = arith.constant 0 : index
    %c0_0 = arith.constant 0 : index
    %c0_1 = arith.constant 0 : index
    %0 = vector.load %arg2[%c0, %c0_0, %c0_1] : memref<1x16x128xf32, #tpu.memory_space<vmem>>, vector<1x16x128xf32>
    %cst = arith.constant 0.000000e+00 : f32
    %1 = vector.broadcast %cst : f32 to vector<1x2x128xf32>
    %2 = tpu.concatenate %1, %0 in 1 : vector<1x2x128xf32>, vector<1x16x128xf32> -> vector<1x18x128xf32>
    %cst_2 = arith.constant 0.000000e+00 : f32
    %3 = vector.broadcast %cst_2 : f32 to vector<16x128xf32>
    %4 = vector.extract_strided_slice %2 {offsets = [0, 0, 0], sizes = [1, 16, 128], strides = [1, 1, 1]} : vector<1x18x128xf32> to vector<1x16x128xf32>
    %5 = vector.shape_cast %4 : vector<1x16x128xf32> to vector<16x128xf32>
    %c0_3 = arith.constant 0 : index
    %c0_4 = arith.constant 0 : index
    %c0_5 = arith.constant 0 : index
    %6 = vector.load %arg3[%c0_3, %c0_4, %c0_5] : memref<3x128x128xf32, #tpu.memory_space<vmem>>, vector<1x128x128xf32>
    %7 = vector.shape_cast %6 : vector<1x128x128xf32> to vector<128x128xf32>
    %cst_6 = arith.constant dense<0.000000e+00> : vector<16x128xf32>
    %8 = tpu.matmul %5, %7, %cst_6 {dimension_numbers = #tpu.dot_dimension_numbers<[1], [0], [0], [1], [0, 0, 1, 1], [], []>} : vector<16x128xf32>, vector<128x128xf32>, vector<16x128xf32> -> vector<16x128xf32>
    %9 = arith.addf %3, %8 : vector<16x128xf32>
    %10 = vector.extract_strided_slice %2 {offsets = [0, 1, 0], sizes = [1, 16, 128], strides = [1, 1, 1]} : vector<1x18x128xf32> to vector<1x16x128xf32>
    %11 = vector.shape_cast %10 : vector<1x16x128xf32> to vector<16x128xf32>
    %c1 = arith.constant 1 : index
    %c0_7 = arith.constant 0 : index
    %c0_8 = arith.constant 0 : index
    %12 = vector.load %arg3[%c1, %c0_7, %c0_8] : memref<3x128x128xf32, #tpu.memory_space<vmem>>, vector<1x128x128xf32>
    %13 = vector.shape_cast %12 : vector<1x128x128xf32> to vector<128x128xf32>
    %cst_9 = arith.constant dense<0.000000e+00> : vector<16x128xf32>
    %14 = tpu.matmul %11, %13, %cst_9 {dimension_numbers = #tpu.dot_dimension_numbers<[1], [0], [0], [1], [0, 0, 1, 1], [], []>} : vector<16x128xf32>, vector<128x128xf32>, vector<16x128xf32> -> vector<16x128xf32>
    %15 = arith.addf %9, %14 : vector<16x128xf32>
    %16 = vector.extract_strided_slice %2 {offsets = [0, 2, 0], sizes = [1, 16, 128], strides = [1, 1, 1]} : vector<1x18x128xf32> to vector<1x16x128xf32>
    %17 = vector.shape_cast %16 : vector<1x16x128xf32> to vector<16x128xf32>
    %c2 = arith.constant 2 : index
    %c0_10 = arith.constant 0 : index
    %c0_11 = arith.constant 0 : index
    %18 = vector.load %arg3[%c2, %c0_10, %c0_11] : memref<3x128x128xf32, #tpu.memory_space<vmem>>, vector<1x128x128xf32>
    %19 = vector.shape_cast %18 : vector<1x128x128xf32> to vector<128x128xf32>
    %c0_12 = arith.constant 0 : index
    %c0_13 = arith.constant 0 : index
    %20 = vector.load %arg7[%c0_12, %c0_13] : memref<128x128xf32, #tpu.memory_space<vmem>>, vector<128x128xf32>
    %21 = tpu.concatenate %19, %20 in 1 : vector<128x128xf32>, vector<128x128xf32> -> vector<128x256xf32>
    %cst_14 = arith.constant dense<0.000000e+00> : vector<16x256xf32>
    %22 = tpu.matmul %17, %21, %cst_14 {dimension_numbers = #tpu.dot_dimension_numbers<[1], [0], [0], [1], [0, 0, 1, 1], [], []>} : vector<16x128xf32>, vector<128x256xf32>, vector<16x256xf32> -> vector<16x256xf32>
    %23 = vector.extract_strided_slice %22 {offsets = [0, 128], sizes = [16, 128], strides = [1, 1]} : vector<16x256xf32> to vector<16x128xf32>
    %c0_15 = arith.constant 0 : index
    %c0_16 = arith.constant 0 : index
    %24 = vector.load %arg8[%c0_15, %c0_16] : memref<1x128xf32, #tpu.memory_space<vmem>>, vector<1x128xf32>
    %25 = vector.broadcast %24 : vector<1x128xf32> to vector<16x128xf32>
    %26 = arith.addf %23, %25 : vector<16x128xf32>
    %27 = vector.extract_strided_slice %22 {offsets = [0, 0], sizes = [16, 128], strides = [1, 1]} : vector<16x256xf32> to vector<16x128xf32>
    %28 = arith.addf %15, %27 : vector<16x128xf32>
    %c0_17 = arith.constant 0 : index
    %c0_18 = arith.constant 0 : index
    %29 = vector.load %arg4[%c0_17, %c0_18] : memref<1x128xf32, #tpu.memory_space<vmem>>, vector<1x128xf32>
    %30 = vector.broadcast %29 : vector<1x128xf32> to vector<16x128xf32>
    %31 = arith.addf %28, %30 : vector<16x128xf32>
    %cst_19 = arith.constant 0.000000e+00 : f32
    %32 = vector.broadcast %cst_19 : f32 to vector<16x128xf32>
    %33 = arith.maximumf %31, %32 : vector<16x128xf32>
    %34 = vector.shape_cast %33 : vector<16x128xf32> to vector<1x16x128xf32>
    %cst_20 = arith.constant 0.000000e+00 : f32
    %35 = vector.broadcast %cst_20 : f32 to vector<1x2x128xf32>
    %36 = tpu.concatenate %35, %34 in 1 : vector<1x2x128xf32>, vector<1x16x128xf32> -> vector<1x18x128xf32>
    %cst_21 = arith.constant 0.000000e+00 : f32
    %37 = vector.broadcast %cst_21 : f32 to vector<16x128xf32>
    %38 = vector.extract_strided_slice %36 {offsets = [0, 0, 0], sizes = [1, 16, 128], strides = [1, 1, 1]} : vector<1x18x128xf32> to vector<1x16x128xf32>
    %39 = vector.shape_cast %38 : vector<1x16x128xf32> to vector<16x128xf32>
    %c0_22 = arith.constant 0 : index
    %c0_23 = arith.constant 0 : index
    %c0_24 = arith.constant 0 : index
    %40 = vector.load %arg5[%c0_22, %c0_23, %c0_24] : memref<3x128x128xf32, #tpu.memory_space<vmem>>, vector<1x128x128xf32>
    %41 = vector.shape_cast %40 : vector<1x128x128xf32> to vector<128x128xf32>
    %cst_25 = arith.constant dense<0.000000e+00> : vector<16x128xf32>
    %42 = tpu.matmul %39, %41, %cst_25 {dimension_numbers = #tpu.dot_dimension_numbers<[1], [0], [0], [1], [0, 0, 1, 1], [], []>} : vector<16x128xf32>, vector<128x128xf32>, vector<16x128xf32> -> vector<16x128xf32>
    %43 = arith.addf %37, %42 : vector<16x128xf32>
    %44 = vector.extract_strided_slice %36 {offsets = [0, 1, 0], sizes = [1, 16, 128], strides = [1, 1, 1]} : vector<1x18x128xf32> to vector<1x16x128xf32>
    %45 = vector.shape_cast %44 : vector<1x16x128xf32> to vector<16x128xf32>
    %c1_26 = arith.constant 1 : index
    %c0_27 = arith.constant 0 : index
    %c0_28 = arith.constant 0 : index
    %46 = vector.load %arg5[%c1_26, %c0_27, %c0_28] : memref<3x128x128xf32, #tpu.memory_space<vmem>>, vector<1x128x128xf32>
    %47 = vector.shape_cast %46 : vector<1x128x128xf32> to vector<128x128xf32>
    %cst_29 = arith.constant dense<0.000000e+00> : vector<16x128xf32>
    %48 = tpu.matmul %45, %47, %cst_29 {dimension_numbers = #tpu.dot_dimension_numbers<[1], [0], [0], [1], [0, 0, 1, 1], [], []>} : vector<16x128xf32>, vector<128x128xf32>, vector<16x128xf32> -> vector<16x128xf32>
    %49 = arith.addf %43, %48 : vector<16x128xf32>
    %50 = vector.extract_strided_slice %36 {offsets = [0, 2, 0], sizes = [1, 16, 128], strides = [1, 1, 1]} : vector<1x18x128xf32> to vector<1x16x128xf32>
    %51 = vector.shape_cast %50 : vector<1x16x128xf32> to vector<16x128xf32>
    %c2_30 = arith.constant 2 : index
    %c0_31 = arith.constant 0 : index
    %c0_32 = arith.constant 0 : index
    %52 = vector.load %arg5[%c2_30, %c0_31, %c0_32] : memref<3x128x128xf32, #tpu.memory_space<vmem>>, vector<1x128x128xf32>
    %53 = vector.shape_cast %52 : vector<1x128x128xf32> to vector<128x128xf32>
    %cst_33 = arith.constant dense<0.000000e+00> : vector<16x128xf32>
    %54 = tpu.matmul %51, %53, %cst_33 {dimension_numbers = #tpu.dot_dimension_numbers<[1], [0], [0], [1], [0, 0, 1, 1], [], []>} : vector<16x128xf32>, vector<128x128xf32>, vector<16x128xf32> -> vector<16x128xf32>
    %55 = arith.addf %49, %54 : vector<16x128xf32>
    %c0_34 = arith.constant 0 : index
    %c0_35 = arith.constant 0 : index
    %56 = vector.load %arg6[%c0_34, %c0_35] : memref<1x128xf32, #tpu.memory_space<vmem>>, vector<1x128xf32>
    %57 = vector.broadcast %56 : vector<1x128xf32> to vector<16x128xf32>
    %58 = arith.addf %55, %57 : vector<16x128xf32>
    %cst_36 = arith.constant 0.000000e+00 : f32
    %59 = vector.broadcast %cst_36 : f32 to vector<16x128xf32>
    %60 = arith.maximumf %58, %59 : vector<16x128xf32>
    %61 = arith.addf %60, %26 : vector<16x128xf32>
    %cst_37 = arith.constant 0.000000e+00 : f32
    %62 = vector.broadcast %cst_37 : f32 to vector<16x128xf32>
    %63 = arith.maximumf %61, %62 : vector<16x128xf32>
    %64 = vector.shape_cast %63 : vector<16x128xf32> to vector<1x16x128xf32>
    %cst_38 = arith.constant 0.000000e+00 : f32
    %65 = vector.broadcast %cst_38 : f32 to vector<1x4x128xf32>
    %66 = tpu.concatenate %65, %64 in 1 : vector<1x4x128xf32>, vector<1x16x128xf32> -> vector<1x20x128xf32>
    %cst_39 = arith.constant 0.000000e+00 : f32
    %67 = vector.broadcast %cst_39 : f32 to vector<16x128xf32>
    %68 = vector.extract_strided_slice %66 {offsets = [0, 0, 0], sizes = [1, 16, 128], strides = [1, 1, 1]} : vector<1x20x128xf32> to vector<1x16x128xf32>
    %69 = vector.shape_cast %68 : vector<1x16x128xf32> to vector<16x128xf32>
    %c0_40 = arith.constant 0 : index
    %c0_41 = arith.constant 0 : index
    %c0_42 = arith.constant 0 : index
    %70 = vector.load %arg9[%c0_40, %c0_41, %c0_42] : memref<3x128x128xf32, #tpu.memory_space<vmem>>, vector<1x128x128xf32>
    %71 = vector.shape_cast %70 : vector<1x128x128xf32> to vector<128x128xf32>
    %cst_43 = arith.constant dense<0.000000e+00> : vector<16x128xf32>
    %72 = tpu.matmul %69, %71, %cst_43 {dimension_numbers = #tpu.dot_dimension_numbers<[1], [0], [0], [1], [0, 0, 1, 1], [], []>} : vector<16x128xf32>, vector<128x128xf32>, vector<16x128xf32> -> vector<16x128xf32>
    %73 = arith.addf %67, %72 : vector<16x128xf32>
    %74 = vector.extract_strided_slice %66 {offsets = [0, 2, 0], sizes = [1, 16, 128], strides = [1, 1, 1]} : vector<1x20x128xf32> to vector<1x16x128xf32>
    %75 = vector.shape_cast %74 : vector<1x16x128xf32> to vector<16x128xf32>
    %c1_44 = arith.constant 1 : index
    %c0_45 = arith.constant 0 : index
    %c0_46 = arith.constant 0 : index
    %76 = vector.load %arg9[%c1_44, %c0_45, %c0_46] : memref<3x128x128xf32, #tpu.memory_space<vmem>>, vector<1x128x128xf32>
    %77 = vector.shape_cast %76 : vector<1x128x128xf32> to vector<128x128xf32>
    %cst_47 = arith.constant dense<0.000000e+00> : vector<16x128xf32>
    %78 = tpu.matmul %75, %77, %cst_47 {dimension_numbers = #tpu.dot_dimension_numbers<[1], [0], [0], [1], [0, 0, 1, 1], [], []>} : vector<16x128xf32>, vector<128x128xf32>, vector<16x128xf32> -> vector<16x128xf32>
    %79 = arith.addf %73, %78 : vector<16x128xf32>
    %80 = vector.extract_strided_slice %66 {offsets = [0, 4, 0], sizes = [1, 16, 128], strides = [1, 1, 1]} : vector<1x20x128xf32> to vector<1x16x128xf32>
    %81 = vector.shape_cast %80 : vector<1x16x128xf32> to vector<16x128xf32>
    %c2_48 = arith.constant 2 : index
    %c0_49 = arith.constant 0 : index
    %c0_50 = arith.constant 0 : index
    %82 = vector.load %arg9[%c2_48, %c0_49, %c0_50] : memref<3x128x128xf32, #tpu.memory_space<vmem>>, vector<1x128x128xf32>
    %83 = vector.shape_cast %82 : vector<1x128x128xf32> to vector<128x128xf32>
    %cst_51 = arith.constant dense<0.000000e+00> : vector<16x128xf32>
    %84 = tpu.matmul %81, %83, %cst_51 {dimension_numbers = #tpu.dot_dimension_numbers<[1], [0], [0], [1], [0, 0, 1, 1], [], []>} : vector<16x128xf32>, vector<128x128xf32>, vector<16x128xf32> -> vector<16x128xf32>
    %85 = arith.addf %79, %84 : vector<16x128xf32>
    %86 = vector.shape_cast %64 : vector<1x16x128xf32> to vector<16x128xf32>
    %c0_52 = arith.constant 0 : index
    %c0_53 = arith.constant 0 : index
    %87 = vector.load %arg10[%c0_52, %c0_53] : memref<1x128xf32, #tpu.memory_space<vmem>>, vector<1x128xf32>
    %88 = vector.broadcast %87 : vector<1x128xf32> to vector<16x128xf32>
    %89 = arith.addf %85, %88 : vector<16x128xf32>
    %cst_54 = arith.constant 0.000000e+00 : f32
    %90 = vector.broadcast %cst_54 : f32 to vector<16x128xf32>
    %91 = arith.maximumf %89, %90 : vector<16x128xf32>
    %92 = vector.shape_cast %91 : vector<16x128xf32> to vector<1x16x128xf32>
    %cst_55 = arith.constant 0.000000e+00 : f32
    %93 = vector.broadcast %cst_55 : f32 to vector<1x4x128xf32>
    %94 = tpu.concatenate %93, %92 in 1 : vector<1x4x128xf32>, vector<1x16x128xf32> -> vector<1x20x128xf32>
    %cst_56 = arith.constant 0.000000e+00 : f32
    %95 = vector.broadcast %cst_56 : f32 to vector<16x128xf32>
    %96 = vector.extract_strided_slice %94 {offsets = [0, 0, 0], sizes = [1, 16, 128], strides = [1, 1, 1]} : vector<1x20x128xf32> to vector<1x16x128xf32>
    %97 = vector.shape_cast %96 : vector<1x16x128xf32> to vector<16x128xf32>
    %c0_57 = arith.constant 0 : index
    %c0_58 = arith.constant 0 : index
    %c0_59 = arith.constant 0 : index
    %98 = vector.load %arg11[%c0_57, %c0_58, %c0_59] : memref<3x128x128xf32, #tpu.memory_space<vmem>>, vector<1x128x128xf32>
    %99 = vector.shape_cast %98 : vector<1x128x128xf32> to vector<128x128xf32>
    %cst_60 = arith.constant dense<0.000000e+00> : vector<16x128xf32>
    %100 = tpu.matmul %97, %99, %cst_60 {dimension_numbers = #tpu.dot_dimension_numbers<[1], [0], [0], [1], [0, 0, 1, 1], [], []>} : vector<16x128xf32>, vector<128x128xf32>, vector<16x128xf32> -> vector<16x128xf32>
    %101 = arith.addf %95, %100 : vector<16x128xf32>
    %102 = vector.extract_strided_slice %94 {offsets = [0, 2, 0], sizes = [1, 16, 128], strides = [1, 1, 1]} : vector<1x20x128xf32> to vector<1x16x128xf32>
    %103 = vector.shape_cast %102 : vector<1x16x128xf32> to vector<16x128xf32>
    %c1_61 = arith.constant 1 : index
    %c0_62 = arith.constant 0 : index
    %c0_63 = arith.constant 0 : index
    %104 = vector.load %arg11[%c1_61, %c0_62, %c0_63] : memref<3x128x128xf32, #tpu.memory_space<vmem>>, vector<1x128x128xf32>
    %105 = vector.shape_cast %104 : vector<1x128x128xf32> to vector<128x128xf32>
    %cst_64 = arith.constant dense<0.000000e+00> : vector<16x128xf32>
    %106 = tpu.matmul %103, %105, %cst_64 {dimension_numbers = #tpu.dot_dimension_numbers<[1], [0], [0], [1], [0, 0, 1, 1], [], []>} : vector<16x128xf32>, vector<128x128xf32>, vector<16x128xf32> -> vector<16x128xf32>
    %107 = arith.addf %101, %106 : vector<16x128xf32>
    %108 = vector.extract_strided_slice %94 {offsets = [0, 4, 0], sizes = [1, 16, 128], strides = [1, 1, 1]} : vector<1x20x128xf32> to vector<1x16x128xf32>
    %109 = vector.shape_cast %108 : vector<1x16x128xf32> to vector<16x128xf32>
    %c2_65 = arith.constant 2 : index
    %c0_66 = arith.constant 0 : index
    %c0_67 = arith.constant 0 : index
    %110 = vector.load %arg11[%c2_65, %c0_66, %c0_67] : memref<3x128x128xf32, #tpu.memory_space<vmem>>, vector<1x128x128xf32>
    %111 = vector.shape_cast %110 : vector<1x128x128xf32> to vector<128x128xf32>
    %cst_68 = arith.constant dense<0.000000e+00> : vector<16x128xf32>
    %112 = tpu.matmul %109, %111, %cst_68 {dimension_numbers = #tpu.dot_dimension_numbers<[1], [0], [0], [1], [0, 0, 1, 1], [], []>} : vector<16x128xf32>, vector<128x128xf32>, vector<16x128xf32> -> vector<16x128xf32>
    %113 = arith.addf %107, %112 : vector<16x128xf32>
    %c0_69 = arith.constant 0 : index
    %c0_70 = arith.constant 0 : index
    %114 = vector.load %arg12[%c0_69, %c0_70] : memref<1x128xf32, #tpu.memory_space<vmem>>, vector<1x128xf32>
    %115 = vector.broadcast %114 : vector<1x128xf32> to vector<16x128xf32>
    %116 = arith.addf %113, %115 : vector<16x128xf32>
    %cst_71 = arith.constant 0.000000e+00 : f32
    %117 = vector.broadcast %cst_71 : f32 to vector<16x128xf32>
    %118 = arith.maximumf %116, %117 : vector<16x128xf32>
    %119 = arith.addf %118, %86 : vector<16x128xf32>
    %cst_72 = arith.constant 0.000000e+00 : f32
    %120 = vector.broadcast %cst_72 : f32 to vector<16x128xf32>
    %121 = arith.maximumf %119, %120 : vector<16x128xf32>
    %122 = vector.shape_cast %121 : vector<16x128xf32> to vector<1x16x128xf32>
    %cst_73 = arith.constant 0.000000e+00 : f32
    %123 = vector.broadcast %cst_73 : f32 to vector<1x8x128xf32>
    %124 = tpu.concatenate %123, %122 in 1 : vector<1x8x128xf32>, vector<1x16x128xf32> -> vector<1x24x128xf32>
    %cst_74 = arith.constant 0.000000e+00 : f32
    %125 = vector.broadcast %cst_74 : f32 to vector<16x128xf32>
    %126 = vector.extract_strided_slice %124 {offsets = [0, 0, 0], sizes = [1, 16, 128], strides = [1, 1, 1]} : vector<1x24x128xf32> to vector<1x16x128xf32>
    %127 = vector.shape_cast %126 : vector<1x16x128xf32> to vector<16x128xf32>
    %c0_75 = arith.constant 0 : index
    %c0_76 = arith.constant 0 : index
    %c0_77 = arith.constant 0 : index
    %128 = vector.load %arg13[%c0_75, %c0_76, %c0_77] : memref<3x128x128xf32, #tpu.memory_space<vmem>>, vector<1x128x128xf32>
    %129 = vector.shape_cast %128 : vector<1x128x128xf32> to vector<128x128xf32>
    %cst_78 = arith.constant dense<0.000000e+00> : vector<16x128xf32>
    %130 = tpu.matmul %127, %129, %cst_78 {dimension_numbers = #tpu.dot_dimension_numbers<[1], [0], [0], [1], [0, 0, 1, 1], [], []>} : vector<16x128xf32>, vector<128x128xf32>, vector<16x128xf32> -> vector<16x128xf32>
    %131 = arith.addf %125, %130 : vector<16x128xf32>
    %132 = vector.extract_strided_slice %124 {offsets = [0, 4, 0], sizes = [1, 16, 128], strides = [1, 1, 1]} : vector<1x24x128xf32> to vector<1x16x128xf32>
    %133 = vector.shape_cast %132 : vector<1x16x128xf32> to vector<16x128xf32>
    %c1_79 = arith.constant 1 : index
    %c0_80 = arith.constant 0 : index
    %c0_81 = arith.constant 0 : index
    %134 = vector.load %arg13[%c1_79, %c0_80, %c0_81] : memref<3x128x128xf32, #tpu.memory_space<vmem>>, vector<1x128x128xf32>
    %135 = vector.shape_cast %134 : vector<1x128x128xf32> to vector<128x128xf32>
    %cst_82 = arith.constant dense<0.000000e+00> : vector<16x128xf32>
    %136 = tpu.matmul %133, %135, %cst_82 {dimension_numbers = #tpu.dot_dimension_numbers<[1], [0], [0], [1], [0, 0, 1, 1], [], []>} : vector<16x128xf32>, vector<128x128xf32>, vector<16x128xf32> -> vector<16x128xf32>
    %137 = arith.addf %131, %136 : vector<16x128xf32>
    %138 = vector.extract_strided_slice %124 {offsets = [0, 8, 0], sizes = [1, 16, 128], strides = [1, 1, 1]} : vector<1x24x128xf32> to vector<1x16x128xf32>
    %139 = vector.shape_cast %138 : vector<1x16x128xf32> to vector<16x128xf32>
    %c2_83 = arith.constant 2 : index
    %c0_84 = arith.constant 0 : index
    %c0_85 = arith.constant 0 : index
    %140 = vector.load %arg13[%c2_83, %c0_84, %c0_85] : memref<3x128x128xf32, #tpu.memory_space<vmem>>, vector<1x128x128xf32>
    %141 = vector.shape_cast %140 : vector<1x128x128xf32> to vector<128x128xf32>
    %c0_86 = arith.constant 0 : index
    %c0_87 = arith.constant 0 : index
    %142 = vector.load %arg17[%c0_86, %c0_87] : memref<128x128xf32, #tpu.memory_space<vmem>>, vector<128x128xf32>
    %143 = tpu.concatenate %141, %142 in 1 : vector<128x128xf32>, vector<128x128xf32> -> vector<128x256xf32>
    %cst_88 = arith.constant dense<0.000000e+00> : vector<16x256xf32>
    %144 = tpu.matmul %139, %143, %cst_88 {dimension_numbers = #tpu.dot_dimension_numbers<[1], [0], [0], [1], [0, 0, 1, 1], [], []>} : vector<16x128xf32>, vector<128x256xf32>, vector<16x256xf32> -> vector<16x256xf32>
    %145 = vector.extract_strided_slice %144 {offsets = [0, 128], sizes = [16, 128], strides = [1, 1]} : vector<16x256xf32> to vector<16x128xf32>
    %c0_89 = arith.constant 0 : index
    %c0_90 = arith.constant 0 : index
    %146 = vector.load %arg18[%c0_89, %c0_90] : memref<1x128xf32, #tpu.memory_space<vmem>>, vector<1x128xf32>
    %147 = vector.broadcast %146 : vector<1x128xf32> to vector<16x128xf32>
    %148 = arith.addf %145, %147 : vector<16x128xf32>
    %149 = vector.extract_strided_slice %144 {offsets = [0, 0], sizes = [16, 128], strides = [1, 1]} : vector<16x256xf32> to vector<16x128xf32>
    %150 = arith.addf %137, %149 : vector<16x128xf32>
    %c0_91 = arith.constant 0 : index
    %c0_92 = arith.constant 0 : index
    %151 = vector.load %arg14[%c0_91, %c0_92] : memref<1x128xf32, #tpu.memory_space<vmem>>, vector<1x128xf32>
    %152 = vector.broadcast %151 : vector<1x128xf32> to vector<16x128xf32>
    %153 = arith.addf %150, %152 : vector<16x128xf32>
    %cst_93 = arith.constant 0.000000e+00 : f32
    %154 = vector.broadcast %cst_93 : f32 to vector<16x128xf32>
    %155 = arith.maximumf %153, %154 : vector<16x128xf32>
    %156 = vector.shape_cast %155 : vector<16x128xf32> to vector<1x16x128xf32>
    %cst_94 = arith.constant 0.000000e+00 : f32
    %157 = vector.broadcast %cst_94 : f32 to vector<1x8x128xf32>
    %158 = tpu.concatenate %157, %156 in 1 : vector<1x8x128xf32>, vector<1x16x128xf32> -> vector<1x24x128xf32>
    %cst_95 = arith.constant 0.000000e+00 : f32
    %159 = vector.broadcast %cst_95 : f32 to vector<16x128xf32>
    %160 = vector.extract_strided_slice %158 {offsets = [0, 0, 0], sizes = [1, 16, 128], strides = [1, 1, 1]} : vector<1x24x128xf32> to vector<1x16x128xf32>
    %161 = vector.shape_cast %160 : vector<1x16x128xf32> to vector<16x128xf32>
    %c0_96 = arith.constant 0 : index
    %c0_97 = arith.constant 0 : index
    %c0_98 = arith.constant 0 : index
    %162 = vector.load %arg15[%c0_96, %c0_97, %c0_98] : memref<3x128x128xf32, #tpu.memory_space<vmem>>, vector<1x128x128xf32>
    %163 = vector.shape_cast %162 : vector<1x128x128xf32> to vector<128x128xf32>
    %cst_99 = arith.constant dense<0.000000e+00> : vector<16x128xf32>
    %164 = tpu.matmul %161, %163, %cst_99 {dimension_numbers = #tpu.dot_dimension_numbers<[1], [0], [0], [1], [0, 0, 1, 1], [], []>} : vector<16x128xf32>, vector<128x128xf32>, vector<16x128xf32> -> vector<16x128xf32>
    %165 = arith.addf %159, %164 : vector<16x128xf32>
    %166 = vector.extract_strided_slice %158 {offsets = [0, 4, 0], sizes = [1, 16, 128], strides = [1, 1, 1]} : vector<1x24x128xf32> to vector<1x16x128xf32>
    %167 = vector.shape_cast %166 : vector<1x16x128xf32> to vector<16x128xf32>
    %c1_100 = arith.constant 1 : index
    %c0_101 = arith.constant 0 : index
    %c0_102 = arith.constant 0 : index
    %168 = vector.load %arg15[%c1_100, %c0_101, %c0_102] : memref<3x128x128xf32, #tpu.memory_space<vmem>>, vector<1x128x128xf32>
    %169 = vector.shape_cast %168 : vector<1x128x128xf32> to vector<128x128xf32>
    %cst_103 = arith.constant dense<0.000000e+00> : vector<16x128xf32>
    %170 = tpu.matmul %167, %169, %cst_103 {dimension_numbers = #tpu.dot_dimension_numbers<[1], [0], [0], [1], [0, 0, 1, 1], [], []>} : vector<16x128xf32>, vector<128x128xf32>, vector<16x128xf32> -> vector<16x128xf32>
    %171 = arith.addf %165, %170 : vector<16x128xf32>
    %172 = vector.extract_strided_slice %158 {offsets = [0, 8, 0], sizes = [1, 16, 128], strides = [1, 1, 1]} : vector<1x24x128xf32> to vector<1x16x128xf32>
    %173 = vector.shape_cast %172 : vector<1x16x128xf32> to vector<16x128xf32>
    %c2_104 = arith.constant 2 : index
    %c0_105 = arith.constant 0 : index
    %c0_106 = arith.constant 0 : index
    %174 = vector.load %arg15[%c2_104, %c0_105, %c0_106] : memref<3x128x128xf32, #tpu.memory_space<vmem>>, vector<1x128x128xf32>
    %175 = vector.shape_cast %174 : vector<1x128x128xf32> to vector<128x128xf32>
    %cst_107 = arith.constant dense<0.000000e+00> : vector<16x128xf32>
    %176 = tpu.matmul %173, %175, %cst_107 {dimension_numbers = #tpu.dot_dimension_numbers<[1], [0], [0], [1], [0, 0, 1, 1], [], []>} : vector<16x128xf32>, vector<128x128xf32>, vector<16x128xf32> -> vector<16x128xf32>
    %177 = arith.addf %171, %176 : vector<16x128xf32>
    %c0_108 = arith.constant 0 : index
    %c0_109 = arith.constant 0 : index
    %178 = vector.load %arg16[%c0_108, %c0_109] : memref<1x128xf32, #tpu.memory_space<vmem>>, vector<1x128xf32>
    %179 = vector.broadcast %178 : vector<1x128xf32> to vector<16x128xf32>
    %180 = arith.addf %177, %179 : vector<16x128xf32>
    %cst_110 = arith.constant 0.000000e+00 : f32
    %181 = vector.broadcast %cst_110 : f32 to vector<16x128xf32>
    %182 = arith.maximumf %180, %181 : vector<16x128xf32>
    %183 = arith.addf %182, %148 : vector<16x128xf32>
    %cst_111 = arith.constant 0.000000e+00 : f32
    %184 = vector.broadcast %cst_111 : f32 to vector<16x128xf32>
    %185 = arith.maximumf %183, %184 : vector<16x128xf32>
    %186 = vector.shape_cast %185 : vector<16x128xf32> to vector<1x16x128xf32>
    %c1_i32 = arith.constant 1 : i32
    %187 = arith.muli %arg0, %c1_i32 : i32
    %188 = tpu.iota {dimensions = array<i32: 0>} : vector<16x1xi32>
    %c0_i32 = arith.constant 0 : i32
    %189 = arith.addi %187, %c0_i32 : i32
    %190 = arith.index_cast %189 : i32 to index
    %191 = memref.load %arg1[%190] : memref<2xi32, #tpu.memory_space<smem>>
    %c1_i32_112 = arith.constant 1 : i32
    %192 = arith.maxsi %191, %c1_i32_112 : i32
    %193 = vector.broadcast %192 : i32 to vector<16x1xi32>
    %194 = arith.cmpi slt, %188, %193 : vector<16x1xi32>
    %195 = arith.extui %194 : vector<16x1xi1> to vector<16x1xi32>
    %196 = arith.sitofp %195 : vector<16x1xi32> to vector<16x1xf32>
    %197 = vector.shape_cast %186 : vector<1x16x128xf32> to vector<16x128xf32>
    %198 = vector.broadcast %196 : vector<16x1xf32> to vector<16x128xf32>
    %199 = arith.mulf %197, %198 : vector<16x128xf32>
    %cst_113 = arith.constant dense<0.000000e+00> : vector<128xf32>
    %200 = vector.multi_reduction <add>, %199, %cst_113 [0] : vector<16x128xf32> to vector<128xf32>
    %201 = vector.shape_cast %200 : vector<128xf32> to vector<1x128xf32>
    %202 = arith.sitofp %192 : i32 to f32
    %203 = vector.broadcast %202 : f32 to vector<1x128xf32>
    %204 = arith.divf %201, %203 : vector<1x128xf32>
    %c0_114 = arith.constant 0 : index
    %c0_115 = arith.constant 0 : index
    %205 = vector.load %arg19[%c0_114, %c0_115] : memref<128x128xf32, #tpu.memory_space<vmem>>, vector<128x128xf32>
    %cst_116 = arith.constant dense<0.000000e+00> : vector<1x128xf32>
    %206 = tpu.matmul %204, %205, %cst_116 {dimension_numbers = #tpu.dot_dimension_numbers<[1], [0], [0], [1], [0, 0, 1, 1], [], []>} : vector<1x128xf32>, vector<128x128xf32>, vector<1x128xf32> -> vector<1x128xf32>
    %c0_117 = arith.constant 0 : index
    %c0_118 = arith.constant 0 : index
    %207 = vector.load %arg20[%c0_117, %c0_118] : memref<1x128xf32, #tpu.memory_space<vmem>>, vector<1x128xf32>
    %208 = arith.addf %206, %207 : vector<1x128xf32>
    %209 = vector.shape_cast %208 : vector<1x128xf32> to vector<1x1x128xf32>
    %c0_119 = arith.constant 0 : index
    %c0_120 = arith.constant 0 : index
    %c0_121 = arith.constant 0 : index
    %210 = vector.load %arg21[%c0_119, %c0_120, %c0_121] : memref<1x1x128xf32, #tpu.memory_space<vmem>>, vector<1x1x128xf32>
    tpu.vector_store %arg21[%c0_119, %c0_120, %c0_121], %209 {strides = array<i32>} : memref<1x1x128xf32, #tpu.memory_space<vmem>>, vector<1x1x128xf32>,
    return
  }
  func.func @transform_0(%arg0: i32, %arg1: memref<2xi32, #tpu.memory_space<smem>>) -> (i32, i32, i32) {
    %c0_i32 = arith.constant 0 : i32
    %c0_i32_0 = arith.constant 0 : i32
    %c0_i32_1 = arith.constant 0 : i32
    return %arg0, %c0_i32, %c0_i32_0 : i32, i32, i32
  }
  func.func @transform_1(%arg0: i32, %arg1: memref<2xi32, #tpu.memory_space<smem>>) -> (i32, i32, i32) {
    %c0_i32 = arith.constant 0 : i32
    %c0_i32_0 = arith.constant 0 : i32
    %c0_i32_1 = arith.constant 0 : i32
    %c0_i32_2 = arith.constant 0 : i32
    return %c0_i32, %c0_i32_0, %c0_i32_1 : i32, i32, i32
  }
  func.func @transform_2(%arg0: i32, %arg1: memref<2xi32, #tpu.memory_space<smem>>) -> (i32, i32) {
    %c0_i32 = arith.constant 0 : i32
    %c0_i32_0 = arith.constant 0 : i32
    %c0_i32_1 = arith.constant 0 : i32
    return %c0_i32, %c0_i32_0 : i32, i32
  }
  func.func @transform_3(%arg0: i32, %arg1: memref<2xi32, #tpu.memory_space<smem>>) -> (i32, i32, i32) {
    %c0_i32 = arith.constant 0 : i32
    %c0_i32_0 = arith.constant 0 : i32
    %c0_i32_1 = arith.constant 0 : i32
    %c0_i32_2 = arith.constant 0 : i32
    return %c0_i32, %c0_i32_0, %c0_i32_1 : i32, i32, i32
  }
  func.func @transform_4(%arg0: i32, %arg1: memref<2xi32, #tpu.memory_space<smem>>) -> (i32, i32) {
    %c0_i32 = arith.constant 0 : i32
    %c0_i32_0 = arith.constant 0 : i32
    %c0_i32_1 = arith.constant 0 : i32
    return %c0_i32, %c0_i32_0 : i32, i32
  }
  func.func @transform_5(%arg0: i32, %arg1: memref<2xi32, #tpu.memory_space<smem>>) -> (i32, i32) {
    %c0_i32 = arith.constant 0 : i32
    %c0_i32_0 = arith.constant 0 : i32
    %c0_i32_1 = arith.constant 0 : i32
    return %c0_i32, %c0_i32_0 : i32, i32
  }
  func.func @transform_6(%arg0: i32, %arg1: memref<2xi32, #tpu.memory_space<smem>>) -> (i32, i32) {
    %c0_i32 = arith.constant 0 : i32
    %c0_i32_0 = arith.constant 0 : i32
    %c0_i32_1 = arith.constant 0 : i32
    return %c0_i32, %c0_i32_0 : i32, i32
  }
  func.func @transform_7(%arg0: i32, %arg1: memref<2xi32, #tpu.memory_space<smem>>) -> (i32, i32, i32) {
    %c0_i32 = arith.constant 0 : i32
    %c0_i32_0 = arith.constant 0 : i32
    %c0_i32_1 = arith.constant 0 : i32
    %c0_i32_2 = arith.constant 0 : i32
    return %c0_i32, %c0_i32_0, %c0_i32_1 : i32, i32, i32
  }
  func.func @transform_8(%arg0: i32, %arg1: memref<2xi32, #tpu.memory_space<smem>>) -> (i32, i32) {
    %c0_i32 = arith.constant 0 : i32
    %c0_i32_0 = arith.constant 0 : i32
    %c0_i32_1 = arith.constant 0 : i32
    return %c0_i32, %c0_i32_0 : i32, i32
  }
  func.func @transform_9(%arg0: i32, %arg1: memref<2xi32, #tpu.memory_space<smem>>) -> (i32, i32, i32) {
    %c0_i32 = arith.constant 0 : i32
    %c0_i32_0 = arith.constant 0 : i32
    %c0_i32_1 = arith.constant 0 : i32
    %c0_i32_2 = arith.constant 0 : i32
    return %c0_i32, %c0_i32_0, %c0_i32_1 : i32, i32, i32
  }
  func.func @transform_10(%arg0: i32, %arg1: memref<2xi32, #tpu.memory_space<smem>>) -> (i32, i32) {
    %c0_i32 = arith.constant 0 : i32
    %c0_i32_0 = arith.constant 0 : i32
    %c0_i32_1 = arith.constant 0 : i32
    return %c0_i32, %c0_i32_0 : i32, i32
  }
  func.func @transform_11(%arg0: i32, %arg1: memref<2xi32, #tpu.memory_space<smem>>) -> (i32, i32, i32) {
    %c0_i32 = arith.constant 0 : i32
    %c0_i32_0 = arith.constant 0 : i32
    %c0_i32_1 = arith.constant 0 : i32
    %c0_i32_2 = arith.constant 0 : i32
    return %c0_i32, %c0_i32_0, %c0_i32_1 : i32, i32, i32
  }
  func.func @transform_12(%arg0: i32, %arg1: memref<2xi32, #tpu.memory_space<smem>>) -> (i32, i32) {
    %c0_i32 = arith.constant 0 : i32
    %c0_i32_0 = arith.constant 0 : i32
    %c0_i32_1 = arith.constant 0 : i32
    return %c0_i32, %c0_i32_0 : i32, i32
  }
  func.func @transform_13(%arg0: i32, %arg1: memref<2xi32, #tpu.memory_space<smem>>) -> (i32, i32, i32) {
    %c0_i32 = arith.constant 0 : i32
    %c0_i32_0 = arith.constant 0 : i32
    %c0_i32_1 = arith.constant 0 : i32
    %c0_i32_2 = arith.constant 0 : i32
    return %c0_i32, %c0_i32_0, %c0_i32_1 : i32, i32, i32
  }
  func.func @transform_14(%arg0: i32, %arg1: memref<2xi32, #tpu.memory_space<smem>>) -> (i32, i32) {
    %c0_i32 = arith.constant 0 : i32
    %c0_i32_0 = arith.constant 0 : i32
    %c0_i32_1 = arith.constant 0 : i32
    return %c0_i32, %c0_i32_0 : i32, i32
  }
  func.func @transform_15(%arg0: i32, %arg1: memref<2xi32, #tpu.memory_space<smem>>) -> (i32, i32) {
    %c0_i32 = arith.constant 0 : i32
    %c0_i32_0 = arith.constant 0 : i32
    %c0_i32_1 = arith.constant 0 : i32
    return %c0_i32, %c0_i32_0 : i32, i32
  }
  func.func @transform_16(%arg0: i32, %arg1: memref<2xi32, #tpu.memory_space<smem>>) -> (i32, i32) {
    %c0_i32 = arith.constant 0 : i32
    %c0_i32_0 = arith.constant 0 : i32
    %c0_i32_1 = arith.constant 0 : i32
    return %c0_i32, %c0_i32_0 : i32, i32
  }
  func.func @transform_17(%arg0: i32, %arg1: memref<2xi32, #tpu.memory_space<smem>>) -> (i32, i32) {
    %c0_i32 = arith.constant 0 : i32
    %c0_i32_0 = arith.constant 0 : i32
    %c0_i32_1 = arith.constant 0 : i32
    return %c0_i32, %c0_i32_0 : i32, i32
  }
  func.func @transform_18(%arg0: i32, %arg1: memref<2xi32, #tpu.memory_space<smem>>) -> (i32, i32) {
    %c0_i32 = arith.constant 0 : i32
    %c0_i32_0 = arith.constant 0 : i32
    %c0_i32_1 = arith.constant 0 : i32
    return %c0_i32, %c0_i32_0 : i32, i32
  }
  func.func @transform_19(%arg0: i32, %arg1: memref<2xi32, #tpu.memory_space<smem>>) -> (i32, i32, i32) {
    %c0_i32 = arith.constant 0 : i32
    %c0_i32_0 = arith.constant 0 : i32
    %c0_i32_1 = arith.constant 0 : i32
    return %arg0, %c0_i32, %c0_i32_0 : i32, i32, i32
  }
}

</mosaic_0001>

<bundles_post_ra>
// kernel: tpu_custom_call.1
= control target key start
LH: loop header
LB: loop body
LE: loop exit
PB: predicated region body
PF: predicated region fallthrough
CT: control target
= control target key end

     0   :  { %s2606_s24 = smov [#allocation3]   ;;  %s3084_s0 = inlined_call_operand.hbm [shape: s32[2], index: 0, kind: input, shape index: {}]   ;;  %s3085_s1 = inlined_call_operand.hbm [shape: f32[2,16,128], index: 1, kind: input, shape index: {}]   ;;  %s3086_s2 = inlined_call_operand.hbm [shape: f32[3,128,128], index: 2, kind: input, shape index: {}]   ;;  %s3087_s3 = inlined_call_operand.vmem [shape: f32[1,128], index: 3, kind: input, shape index: {}]   ;;  %s3088_s4 = inlined_call_operand.hbm [shape: f32[3,128,128], index: 4, kind: input, shape index: {}]   ;;  %s3089_s5 = inlined_call_operand.vmem [shape: f32[1,128], index: 5, kind: input, shape index: {}]   ;;  %s3090_s6 = inlined_call_operand.hbm [shape: f32[128,128], index: 6, kind: input, shape index: {}]   ;;  %s3091_s7 = inlined_call_operand.vmem [shape: f32[1,128], index: 7, kind: input, shape index: {}]   ;;  %s3092_s8 = inlined_call_operand.hbm [shape: f32[3,128,128], index: 8, kind: input, shape index: {}]   ;;  %s3093_s9 = inlined_call_operand.vmem [shape: f32[1,128], index: 9, kind: input, shape index: {}]   ;;  %s3094_s10 = inlined_call_operand.hbm [shape: f32[3,128,128], index: 10, kind: input, shape index: {}]   ;;  %s3095_s11 = inlined_call_operand.vmem [shape: f32[1,128], index: 11, kind: input, shape index: {}]   ;;  %s3096_s12 = inlined_call_operand.hbm [shape: f32[3,128,128], index: 12, kind: input, shape index: {}]   ;;  %s3097_s13 = inlined_call_operand.vmem [shape: f32[1,128], index: 13, kind: input, shape index: {}]   ;;  %s3098_s14 = inlined_call_operand.hbm [shape: f32[3,128,128], index: 14, kind: input, shape index: {}]   ;;  %s3099_s15 = inlined_call_operand.vmem [shape: f32[1,128], index: 15, kind: input, shape index: {}]   ;;  %s3100_s16 = inlined_call_operand.hbm [shape: f32[128,128], index: 16, kind: input, shape index: {}]   ;;  %s3101_s17 = inlined_call_operand.vmem [shape: f32[1,128], index: 17, kind: input, shape index: {}]   ;;  %s3102_s18 = inlined_call_operand.hbm [shape: f32[128,128], index: 18, kind: input, shape index: {}]   ;;  %s3103_s19 = inlined_call_operand.vmem [shape: f32[1,128], index: 19, kind: input, shape index: {}]   ;;  %s3104_s20 = inlined_call_operand.hbm [shape: f32[2,1,128], index: 20, kind: output, shape index: {}]  }
   0x1   :  { %3109 = sst [smem:[#allocation30_spill]] %s3084_s0 }
   0x2   :  { %3110 = sst [smem:[#allocation31_spill]] %s3085_s1 }
   0x3   :  { %3111 = sst [smem:[#allocation32_spill]] %s3086_s2 }
   0x4   :  { %3112 = sst [smem:[#allocation33_spill]] %s3087_s3 }
   0x5   :  { %3113 = sst [smem:[#allocation34_spill]] %s3088_s4 }
   0x6   :  { %3114 = sst [smem:[#allocation35_spill]] %s3090_s6 }
   0x7   :  { %3115 = sst [smem:[#allocation36_spill]] %s3092_s8 }
   0x8   :  { %3116 = sst [smem:[#allocation37_spill]] %s3094_s10 }
   0x9   :  { %3117 = sst [smem:[#allocation38_spill]] %s3096_s12 }
   0xa   :  { %3118 = sst [smem:[#allocation39_spill]] %s3097_s13 }
   0xb   :  { %3119 = sst [smem:[#allocation40_spill]] %s3098_s14 }
   0xc   :  { %3120 = sst [smem:[#allocation41_spill]] %s3099_s15 }
   0xd   :  { %3121 = sst [smem:[#allocation42_spill]] %s3101_s17 }
   0xe   :  { %3122 = sst [smem:[#allocation43_spill]] %s3103_s19 }
   0xf   :  { %3123 = sst [smem:[#allocation44_spill]] %s3104_s20 }
  0x10   :  { %s3124_s23 = sld [smem:[#allocation30_spill]] }
  0x16   :  { %s26_s13 = sshll.u32 %s3124_s23, 4  ;;  %s27_s13 = int_to_ptr.hbm [resolvable:$true] %s26_s13 }
  0x17   :  { %29 = dma.hbm_to_smem %s27_s13, 16, %s2606_s24, [#allocation2] }
  0x18   :  { %2560 = dma.done.wait [#allocation2], 16 }
  0x19   :  { %2561 = vsyncadd [#allocation2], 4294967280 }
  0x1a   :  { %32 = sfence }
  0x1b   :  { %33 = vsyncpa [#allocation5], 0 }
  0x1c   :  { %35 = vsyncpa [#allocation5 + $0x1], 0 }
  0x1d   :  { %36 = vsyncpa [#allocation8], 0 }
  0x1e   :  { %37 = vsyncpa [#allocation11], 0 }
  0x1f   :  { %38 = vsyncpa [#allocation14], 0 }
  0x20   :  { %39 = vsyncpa [#allocation17], 0 }
  0x21   :  { %40 = vsyncpa [#allocation20], 0 }
  0x22   :  { %41 = vsyncpa [#allocation6], 0 }
  0x23   :  { %43 = vsyncpa [#allocation6 + $0x1], 0  ;;  %s2727_s2 = smov 0   ;;  %s2729_s25 = smov 0  }
  0x24   :  { %s2731_s3 = smov 0   ;;  %s2733_s26 = smov 0  }
  0x25 LB: > { %s3125_s28 = sld [smem:[#allocation32_spill]]  ;;  %s2751_s29 = sadd.s32 4294967295, %s2604_s26   ;;  %s2604_s26 = sphi %s2733_s26, %s3155_s26   ;;  %s2600_s3 = sphi %s2731_s3, %s3154_s3   ;;  %s2596_s25 = sphi %s2729_s25, %s3153_s25   ;;  %s2592_s2 = sphi %s2727_s2, %s3152_s2  }
  0x26   : > { %p2015_p0 = scmp.ge.s32.totalorder %s2604_s26, 1  ;;  %p70_p1 = scmp.eq.s32.totalorder %s2751_s29, 0 }
  0x27   : > { %p484_p2 = scmp.lt.s32.totalorder %s2604_s26, 3  ;;  %s2607_s0 = smov [#allocation7]  }
  0x28   : > { %s497_s21 = sshll.u32 %s2607_s0, 4  ;;  %s3127_s6 = sld [smem:[#allocation35_spill]]  ;;  %s498_s21 = int_to_ptr.vmem [resolvable:$true] %s497_s21 }
  0x29   : > { %p2756_p3 = pnand %p2015_p0, %p484_p2  ;;  %s3129_s10 = sld [smem:[#allocation37_spill]] }
  0x2a   : > { %s2608_s0 = smov [#allocation10]   ;;  %s3107_s20 = smov 128  }
  0x2b   : > { %s495_s4 = sshll.u32 %s3125_s28, 4  ;;  %p2093_p4 = pneg %p2756_p3  ;;  %s496_s4 = int_to_ptr.hbm [resolvable:$true] %s495_s4 }
  0x2c   : > { %s531_s19 = sshll.u32 %s2608_s0, 4  ;;  %s3108_s17 = smov 8   ;;  %s532_s19 = int_to_ptr.vmem [resolvable:$true] %s531_s19 }
  0x2d   : > { %p2768_p6 = pnand %p2093_p4, %p70_p1  ;;  %s3130_s14 = sld [smem:[#allocation40_spill]] }
  0x2e   : > { %s529_s23 = sshll.u32 %s3127_s6, 4  ;;  %s2611_s27 = smov [#allocation13]   ;;  %s530_s23 = int_to_ptr.hbm [resolvable:$true] %s529_s23 }
  0x2f   : > { %s563_s28 = sshll.u32 %s3129_s10, 4  ;;  %s565_s0 = sshll.u32 %s2611_s27, 4  ;;  %s564_s28 = int_to_ptr.hbm [resolvable:$true] %s563_s28  ;;  %s566_s0 = int_to_ptr.vmem [resolvable:$true] %s565_s0 }
  0x30   : > { %2096 = dma.hbm_to_vmem [thread:$0]  (!%p2768_p6), %s496_s4, 6144, %s498_s21, [#allocation8], %s3107_s20, %s3107_s20, %s3108_s17  }
  0x31   : > { %2102 = dma.hbm_to_vmem [thread:$0]  (!%p2768_p6), %s530_s23, 2048, %s532_s19, [#allocation11], %s3107_s20, %s3107_s20, %s3108_s17  }
  0x32   : > { %2108 = dma.hbm_to_vmem [thread:$0]  (!%p2768_p6), %s564_s28, 6144, %s566_s0, [#allocation14], %s3107_s20, %s3107_s20, %s3108_s17  }
  0x33   : > { %s597_s13 = sshll.u32 %s3130_s14, 4  ;;  %s2612_s4 = smov [#allocation16]   ;;  %s598_s13 = int_to_ptr.hbm [resolvable:$true] %s597_s13 }
  0x34   : > { %s599_s21 = sshll.u32 %s2612_s4, 4  ;;  %s3131_s15 = sld [smem:[#allocation34_spill]]  ;;  %s600_s21 = int_to_ptr.vmem [resolvable:$true] %s599_s21 }
  0x35   : > { %2114 = dma.hbm_to_vmem [thread:$0]  (!%p2768_p6), %s598_s13, 6144, %s600_s21, [#allocation17], %s3107_s20, %s3107_s20, %s3108_s17  }
  0x36   : > { %s3132_s8 = sld [smem:[#allocation36_spill]]  ;;  %s2613_s27 = smov [#allocation9]  }
  0x37   : > { %s514_s28 = sshll.u32 %s2613_s27, 4  ;;  %s2614_s6 = smov [#allocation12]   ;;  %s515_s28 = int_to_ptr.vmem [resolvable:$true] %s514_s28 }
  0x38   : > { %s548_s10 = sshll.u32 %s2614_s6, 4  ;;  %s3133_s12 = sld [smem:[#allocation38_spill]]  ;;  %s549_s10 = int_to_ptr.vmem [resolvable:$true] %s548_s10 }
  0x39   : > { %s614_s23 = sshll.u32 %s3100_s16, 4  ;;  %s2840_s4 = sadd.s32 1, %s2604_s26   ;;  %s615_s23 = int_to_ptr.hbm [resolvable:$true] %s614_s23 }
  0x3a   : > { %s512_s19 = sshll.u32 %s3131_s15, 4  ;;  %s2617_s15 = smov [#allocation19]   ;;  %s513_s19 = int_to_ptr.hbm [resolvable:$true] %s512_s19 }
  0x3b   : > { %2099 = dma.hbm_to_vmem [thread:$0]  (!%p2768_p6), %s513_s19, 6144, %s515_s28, [#allocation8], %s3107_s20, %s3107_s20, %s3108_s17  }
  0x3c   : > { %s546_s22 = sshll.u32 %s3132_s8, 4  ;;  %s2615_s19 = smov [#allocation15]   ;;  %s547_s22 = int_to_ptr.hbm [resolvable:$true] %s546_s22 }
  0x3d   : > { %2105 = dma.hbm_to_vmem [thread:$0]  (!%p2768_p6), %s547_s22, 6144, %s549_s10, [#allocation11], %s3107_s20, %s3107_s20, %s3108_s17  }
  0x3e   : > { %s580_s13 = sshll.u32 %s3133_s12, 4  ;;  %s582_s1 = sshll.u32 %s2615_s19, 4  ;;  %s581_s13 = int_to_ptr.hbm [resolvable:$true] %s580_s13  ;;  %s583_s1 = int_to_ptr.vmem [resolvable:$true] %s582_s1 }
  0x3f   : > { %2111 = dma.hbm_to_vmem [thread:$0]  (!%p2768_p6), %s581_s13, 6144, %s583_s1, [#allocation14], %s3107_s20, %s3107_s20, %s3108_s17  }
  0x40   : > { %s2616_s22 = smov [#allocation18]   ;;  %s631_s10 = sshll.u32 %s3102_s18, 4  ;;  %s632_s10 = int_to_ptr.hbm [resolvable:$true] %s631_s10 }
  0x41   : > { %s616_s27 = sshll.u32 %s2616_s22, 4  ;;  %s633_s0 = sshll.u32 %s2617_s15, 4  ;;  %s617_s27 = int_to_ptr.vmem [resolvable:$true] %s616_s27  ;;  %s634_s0 = int_to_ptr.vmem [resolvable:$true] %s633_s0 }
  0x42   : > { %2117 = dma.hbm_to_vmem [thread:$0]  (!%p2768_p6), %s615_s23, 2048, %s617_s27, [#allocation17], %s3107_s20, %s3107_s20, %s3108_s17  }
  0x43   : > { %2120 = dma.hbm_to_vmem [thread:$0]  (!%p2768_p6), %s632_s10, 2048, %s634_s0, [#allocation20], %s3107_s20, %s3107_s20, %s3108_s17  }
  0x44   : > { %s2014_s13 = sadd.s32 4294967294, %s2604_s26   ;;  %s56_s21 = sadd.s32 1, %s2600_s3 }
  0x45   : > { %s53_s19 = ssub.s32 %s2604_s26, %s2840_s4  ;;  %p63_p7 = scmp.ne.s32.totalorder %s2600_s3, %s2596_s25 }
  0x46   : > { %p54_p8 = scmp.eq.s32.totalorder %s53_s19, 0  ;;  %p64_p9 = scmp.eq.s32.totalorder %s2604_s26, 0 }
  0x47   : > { %p69_p10 = scmp.ne.s32.totalorder %s2596_s25, %s2592_s2  ;;  %p471_p11 = scmp.eq.s32.totalorder %s2751_s29, 1 }
  0x48   : > { %s2852_s23 = scalar_select %p54_p8, %s2600_s3, %s56_s21  }
  0x49   : > { %p2856_p12 = por %p70_p1, %p69_p10  ;;  %p2860_p13 = por %p471_p11, %p63_p7 }
  0x4a   : > { %p477_p0 = scmp.eq.s32.totalorder %s2014_s13, 1  ;;  %p65_p2 = por %p64_p9, %p63_p7 }
  0x4b   : > { %s650_s22 = sand.u32 1, %s2600_s3   ;;  %p2138_p6 = scmp.lt.s32.totalorder %s2604_s26, 2 }
  0x4c   : > { %p2865_p4 = por %p477_p0, %p69_p10  ;;  %s2026_s28 = sshll.u32 %s650_s22, 4 }
  0x4d   : > { %s2052_s6 = sshll.u32 %s2604_s26, 4  ;;  %s3137_s0 = sld [smem:[#allocation31_spill]] }
  0x4e   : > { %s654_s20 = scalar_lea.vmem [#allocation4], %s2026_s28  ;;  %p2874_p8 = pnand %p2138_p6, %p65_p2 }
  0x4f   : > { %s662_s17 = sshll.u32 %s654_s20, 4  ;;  %s651_s8 = scalar_lea.sflag [#allocation5], %s650_s22  ;;  %s663_s17 = int_to_ptr.vmem [resolvable:$true] %s662_s17 }
  0x50   : > { %p2490_p9 = pneg %p2874_p8 }
  0x53   : > { %s659_s21 = scalar_lea.hbm %s3137_s0, %s2052_s6  ;;  %s2493_s20 = scalar_lea.hbm %s3137_s0, 32 }
  0x54   : > { %s660_s19 = sshll.u32 %s659_s21, 4  ;;  %s661_s19 = int_to_ptr.hbm [resolvable:$true] %s660_s19 }
  0x55   : > { %s2486_s12 = sshra.s32 %s661_s19, 4  ;;  %s2487_s12 = int_to_ptr.hbm [resolvable:$true] %s2486_s12 }
  0x56   : > { %s2488_s14 = scalar_lea.hbm %s2487_s12, 16  ;;  %p2494_p0 = scmp.lt.s32.totalorder %s2487_s12, %s3137_s0 }
  0x57   : > { %p2489_p7 = scmp.ne.s32.totalorder %s2487_s12, %s2488_s14  ;;  %p2495_p2 = scmp.lt.s32.totalorder %s2493_s20, %s2488_s14 }
  0x59   : > { %p2491_p10 = pnand %p2490_p9, %p2489_p7  ;;  %p2496_p6 = por %p2495_p2, %p2494_p0 }
  0x5b   : > { %p2492_p11 = pneg %p2491_p10 }
  0x5d   : > { %p2497_p5 = pnand %p2496_p6, %p2492_p11 }
  0x5f   : > { %2500 = shalt.err (!%p2497_p5)
}
  0x60   : > { %s3139_s22 = smov 8   ;;  %s3140_s21 = smov 128  }
  0x61   : > { %2124 = dma.hbm_to_vmem [thread:$0]  (!%p2874_p8), %s661_s19, 256, %s663_s17, %s651_s8, %s3140_s21, %s3140_s21, %s3139_s22  }
  0x62   : > { %674 = sbr.rel (%p2756_p3) target bundleno = 1189 (0x4a5), region = 96  ;;  %s2894_s6 = sand.u32 (!%p2756_p3), 1, %s2596_s25  }
  0x63   : > { %s2030_s12 = sshll.u32 (!%p2756_p3), %s2894_s6, 4  ;;  %s677_s14 = scalar_lea.sflag (!%p2756_p3), [#allocation5], %s2894_s6 }
  0x64   : > { %s2898_s10 = scalar_lea.vmem (!%p2756_p3), [#allocation4], %s2030_s12 }
  0x67   : > { %2563 = dma.done.wait (%p2856_p12), %s677_s14, 256  }
  0x68   : > { %2565 = vsyncadd (%p2856_p12), %s677_s14, 4294967040 }
  0x69   : > { %2567 = dma.done.wait (%p70_p1), [#allocation8], 12288  }
  0x6a   : > { %2569 = vsyncadd (%p70_p1), [#allocation8], 4294955008 }
  0x6b   : > { %2571 = dma.done.wait (%p70_p1), [#allocation11], 8192  }
  0x6c   : > { %2573 = vsyncadd (%p70_p1), [#allocation11], 4294959104 }
  0x6d   : > { %2575 = dma.done.wait (%p70_p1), [#allocation14], 12288  }
  0x6e   : > { %2577 = vsyncadd (%p70_p1), [#allocation14], 4294955008 }
  0x6f   : > { %2579 = dma.done.wait (%p70_p1), [#allocation17], 8192  }
  0x70   : > { %2581 = vsyncadd (%p70_p1), [#allocation17], 4294959104 }
  0x71   : > { %2583 = dma.done.wait (%p70_p1), [#allocation20], 2048  }
  0x72   : > { %2585 = vsyncadd (%p70_p1), [#allocation20], 4294965248  ;;  %v895_v0 = vld [vmem:[#allocation7 + $0x178] sm:$0xff]  ;;  %v894_v1 = vld [vmem:[#allocation7 + $0x170] sm:$0xff]  ;;  %vm784_vm0 = vcmask 1041408   ;;  %vm912_vm1 = vcmask 1045504  }
  0x73   : > { %v823_v2 = vld [vmem:[#allocation7 + $0xf8] sm:$0xff]  ;;  %920 = vmatpush.msra.mxu2 %v895_v0  ;;  %v822_v4 = vld [vmem:[#allocation7 + $0xf0] sm:$0xff]  ;;  %v893_v5 = vld [vmem:[#allocation7 + $0x168] sm:$0xff]  ;;  %vm825_vm2 = vcmask 1046528   ;;  %s3143_s30 = sld [smem:[#allocation33_spill]]  ;;  %vm1140_vm4 = vcmask 1043456  }
  0x74   : > { %833 = vmatpush.msra.mxu0 %v823_v2  ;;  %v806_v3 = vld [vmem:[#allocation7 + $0x78] sm:$0xff]  ;;  %v805_v6 = vld [vmem:[#allocation7 + $0x70] sm:$0xff]  ;;  %v821_v7 = vld [vmem:[#allocation7 + $0xe8] sm:$0xff]  ;;  %s1775_s8 = sld [smem:[#allocation3 + %s2751_s29]] }
  0x75   : > { %856 = vmatpush.msra.mxu1 %v806_v3  ;;  %921 = vmatpush.msra.mxu2 %v894_v1  ;;  %v804_v8 = vld [vmem:[#allocation7 + $0x68] sm:$0xff]  ;;  %v892_v9 = vld [vmem:[#allocation7 + $0x160] sm:$0xff]  ;;  %v891_v12 = vld [vmem:[#allocation7 + $0x158] sm:$0xff]  ;;  %s3147_s19 = sld [smem:[#allocation41_spill]] }
  0x76   : > { %834 = vmatpush.msra.mxu0 %v822_v4  ;;  %v820_v10 = vld [vmem:[#allocation7 + $0xe0] sm:$0xff]  ;;  %v819_v13 = vld [vmem:[#allocation7 + $0xd8] sm:$0xff]  ;;  %v890_v15 = vld [vmem:[#allocation7 + $0x150] sm:$0xff]  ;;  %s3148_s28 = sld [smem:[#allocation42_spill]] }
  0x77   : > { %857 = vmatpush.msra.mxu1 %v805_v6  ;;  %922 = vmatpush.msra.mxu2 %v893_v5  ;;  %v803_v11 = vld [vmem:[#allocation7 + $0x60] sm:$0xff]  ;;  %v802_v14 = vld [vmem:[#allocation7 + $0x58] sm:$0xff]  ;;  %v818_v16 = vld [vmem:[#allocation7 + $0xd0] sm:$0xff]  ;;  %s3149_s21 = sld [smem:[#allocation44_spill]] }
  0x78   : > { %835 = vmatpush.msra.mxu0 %v821_v7  ;;  %v801_v17 = vld [vmem:[#allocation7 + $0x50] sm:$0xff]  ;;  %v889_v18 = vld [vmem:[#allocation7 + $0x148] sm:$0xff]  ;;  %v888_v21 = vld [vmem:[#allocation7 + $0x140] sm:$0xff] }
  0x79   : > { %858 = vmatpush.msra.mxu1 %v804_v8  ;;  %923 = vmatpush.msra.mxu2 %v892_v9  ;;  %v817_v19 = vld [vmem:[#allocation7 + $0xc8] sm:$0xff]  ;;  %v816_v22 = vld [vmem:[#allocation7 + $0xc0] sm:$0xff]  ;;  %v887_v24 = vld [vmem:[#allocation7 + $0x138] sm:$0xff] }
  0x7a   : > { %836 = vmatpush.msra.mxu0 %v820_v10  ;;  %v800_v20 = vld [vmem:[#allocation7 + $0x48] sm:$0xff]  ;;  %v799_v23 = vld [vmem:[#allocation7 + $0x40] sm:$0xff]  ;;  %v815_v25 = vld [vmem:[#allocation7 + $0xb8] sm:$0xff]  ;;  %p1776_p1 = scmp.gt.s32.totalorder %s1775_s8, 1 }
  0x7b   : > { %859 = vmatpush.msra.mxu1 %v803_v11  ;;  %924 = vmatpush.msra.mxu2 %v891_v12  ;;  %v780_v26 = vld [vmem:[%s2898_s10] sm:$0xff]  ;;  %v798_v27 = vld [vmem:[#allocation7 + $0x38] sm:$0xff]  ;;  %v885_v34 = vld [vmem:[#allocation7 + $0x128] sm:$0xff] }
  0x7c   : > { %837 = vmatpush.msra.mxu0 %v819_v13  ;;  %v781_v28 = vld [vmem:[%s2898_s10 + $0x8] sm:$0xff]  ;;  %v886_v29 = vld [vmem:[#allocation7 + $0x130] sm:$0xff]  ;;  %v2926_v31 = vrot.slane %v780_v26, 6  ;;  %v884_v37 = vld [vmem:[#allocation7 + $0x120] sm:$0xff]  ;;  %s3146_s10 = sld [smem:[#allocation39_spill]]  ;;  %s3157_s8 = smov (!%p1776_p1, %s1775_s8), 1 }
  0x7d   : > { %860 = vmatpush.msra.mxu1 %v802_v14  ;;  %925 = vmatpush.msra.mxu2 %v890_v15  ;;  %v814_v30 = vld [vmem:[#allocation7 + $0xb0] sm:$0xff]  ;;  %v2928_v32 = vrot.slane %v781_v28, 6  ;;  %v813_v35 = vld [vmem:[#allocation7 + $0xa8] sm:$0xff]  ;;  %v812_v38 = vld [vmem:[#allocation7 + $0xa0] sm:$0xff]  ;;  %s1794_s17 = scvt.s32.f32 %s3157_s8  ;;  %s1858_s12 = scalar_lea.hbm %s3149_s21, %s2751_s29 }
  0x7e   : > { %838 = vmatpush.msra.mxu0 %v818_v16  ;;  %v797_v33 = vld [vmem:[#allocation7 + $0x30] sm:$0xff]  ;;  %v796_v36 = vld [vmem:[#allocation7 + $0x28] sm:$0xff]  ;;  %v790_v40 = vsel %vm784_vm0, 0.0, %v2926_v31  ;;  %v883_v41 = vld [vmem:[#allocation7 + $0x118] sm:$0xff]  ;;  %s1862_s24 = sshll.u32 %s1858_s12, 4  ;;  %s2536_s15 = scalar_lea.hbm %s3149_s21, 2  ;;  %s1863_s24 = int_to_ptr.hbm [resolvable:$true] %s1862_s24 }
  0x7f   : > { %861 = vmatpush.msra.mxu1 %v801_v17  ;;  %926 = vmatpush.msra.mxu2 %v889_v18  ;;  %v2933_v39 = vsel %vm784_vm0, %v2926_v31, %v2928_v32  ;;  %v795_v42 = vld [vmem:[#allocation7 + $0x20] sm:$0xff]  ;;  %v911_v43 = vld [vmem:[#allocation10 + $0x78] sm:$0xff]  ;;  %v882_v44 = vld [vmem:[#allocation7 + $0x110] sm:$0xff]  ;;  %v913_v50 = vrot.slane %v790_v40, 2  ;;  %v826_v54 = vrot.slane %v790_v40, 1  ;;  %v916_v2 = vrot.slane %v2928_v32, 2 }
  0x80   : > { %839 = vmatpush.msra.mxu0 %v817_v19  ;;  %v811_v45 = vld [vmem:[#allocation7 + $0x98] sm:$0xff]  ;;  %943 = vmatpush.msra.mxu3 %v911_v43  ;;  %v910_v47 = vld [vmem:[#allocation10 + $0x70] sm:$0xff]  ;;  %v914_v51 = vrot.slane %v2933_v39, 2  ;;  %v881_v52 = vld [vmem:[#allocation7 + $0x108] sm:$0xff]  ;;  %v827_v55 = vrot.slane %v2933_v39, 1  ;;  %v829_v5 = vrot.slane %v2928_v32, 1 }
  0x81   : > { %862 = vmatpush.msra.mxu1 %v800_v20  ;;  %927 = vmatpush.msra.mxu2 %v888_v21  ;;  %v794_v46 = vld [vmem:[#allocation7 + $0x18] sm:$0xff]  ;;  %v810_v48 = vld [vmem:[#allocation7 + $0x90] sm:$0xff]  ;;  %v809_v53 = vld [vmem:[#allocation7 + $0x88] sm:$0xff]  ;;  %s2530_s13 = sshra.s32 %s1863_s24, 4  ;;  %s2531_s13 = int_to_ptr.hbm [resolvable:$true] %s2530_s13 }
  0x82   : > { %840 = vmatpush.msra.mxu0 %v816_v22  ;;  %v793_v49 = vld [vmem:[#allocation7 + $0x10] sm:$0xff]  ;;  %944 = vmatpush.msra.mxu3 %v910_v47  ;;  %v792_v56 = vld [vmem:[#allocation7 + $0x8] sm:$0xff]  ;;  %v880_v57 = vld [vmem:[#allocation7 + $0x100] sm:$0xff]  ;;  %v2940_v59 = vsel %vm912_vm1, %v913_v50, %v914_v51  ;;  %v828_v61 = vsel %vm825_vm2, %v826_v54, %v827_v55  ;;  %v2955_v10 = vsel %vm912_vm1, %v914_v51, %v916_v2  ;;  %s2532_s20 = scalar_lea.hbm %s2531_s13, 1  ;;  %p2537_p8 = scmp.lt.s32.totalorder %s2531_s13, %s3149_s21 }
  0x83   : > { %863 = vmatpush.msra.mxu1 %v799_v23  ;;  %928 = vmatpush.msra.mxu2 %v887_v24  ;;  %v808_v58 = vld [vmem:[#allocation7 + $0x80] sm:$0xff]  ;;  %vm2944_vm3 = vmneg %vm784_vm0  ;;  %v1005_v63 = vld [vmem:[#allocation9 + $0x78] sm:$0xff]  ;;  %v830_v12 = vsel %vm825_vm2, %v827_v55, %v829_v5  ;;  %p2533_p3 = scmp.ne.s32.totalorder %s2531_s13, %s2532_s20  ;;  %p2538_p7 = scmp.lt.s32.totalorder %s2536_s15, %s2532_s20 }
  0x84   : > { %841 = vmatpush.msra.mxu0 %v815_v25  ;;  %v791_v60 = vld [vmem:[#allocation7] sm:$0xff]  ;;  %v1022_v0 = vld [vmem:[#allocation9 + $0xf8] sm:$0xff]  ;;  %v1004_v3 = vld [vmem:[#allocation9 + $0x70] sm:$0xff] }
  0x85   : > { %864 = vmatpush.msra.mxu1 %v798_v27  ;;  %929 = vmatpush.msra.mxu2 %v886_v29  ;;  %v1093_v1 = vld [vmem:[#allocation9 + $0x178] sm:$0xff]  ;;  %v1021_v4 = vld [vmem:[#allocation9 + $0xf0] sm:$0xff]  ;;  %v1003_v7 = vld [vmem:[#allocation9 + $0x68] sm:$0xff]  ;;  %p2534_p5 = pnand %p2533_p3, %p2860_p13  ;;  %p2539_p9 = por %p2538_p7, %p2537_p8 }
  0x86   : > { %842 = vmatpush.msra.mxu0 %v814_v30  ;;  %v1092_v6 = vld [vmem:[#allocation9 + $0x170] sm:$0xff]  ;;  %v1020_v8 = vld [vmem:[#allocation9 + $0xe8] sm:$0xff]  ;;  %v1002_v11 = vld [vmem:[#allocation9 + $0x60] sm:$0xff] }
  0x87   : > { %865 = vmatpush.msra.mxu1 %v797_v33  ;;  %930 = vmatpush.msra.mxu2 %v885_v34  ;;  %v1091_v9 = vld [vmem:[#allocation9 + $0x168] sm:$0xff]  ;;  %v1001_v13 = vld [vmem:[#allocation9 + $0x58] sm:$0xff]  ;;  %v1019_v14 = vld [vmem:[#allocation9 + $0xe0] sm:$0xff]  ;;  %p2535_p12 = pneg %p2534_p5 }
  0x88   : > { %843 = vmatpush.msra.mxu0 %v813_v35  ;;  %v1090_v15 = vld [vmem:[#allocation9 + $0x160] sm:$0xff]  ;;  %v1000_v16 = vld [vmem:[#allocation9 + $0x50] sm:$0xff]  ;;  %v999_v17 = vld [vmem:[#allocation9 + $0x48] sm:$0xff] }
  0x89   : > { %866 = vmatpush.msra.mxu1 %v796_v36  ;;  %931 = vmatpush.msra.mxu2 %v884_v37  ;;  %v998_v18 = vld [vmem:[#allocation9 + $0x40] sm:$0xff]  ;;  %v997_v19 = vld [vmem:[#allocation9 + $0x38] sm:$0xff]  ;;  %v996_v20 = vld [vmem:[#allocation9 + $0x30] sm:$0xff]  ;;  %p2540_p10 = pnand %p2539_p9, %p2535_p12 }
  0x8a   : > { %844 = vmatpush.msra.mxu0 %v812_v38  ;;  %v909_v21 = vld [vmem:[#allocation10 + $0x68] sm:$0xff]  ;;  %v1018_v22 = vld [vmem:[#allocation9 + $0xd8] sm:$0xff]  ;;  %v908_v25 = vld [vmem:[#allocation10 + $0x60] sm:$0xff] }
  0x8b   : > { %867 = vmatpush.msra.mxu1 %v795_v42  ;;  %932 = vmatpush.msra.mxu2 %v883_v41  ;;  %v995_v23 = vld [vmem:[#allocation9 + $0x28] sm:$0xff]  ;;  %v1089_v24 = vld [vmem:[#allocation9 + $0x158] sm:$0xff]  ;;  %v1017_v26 = vld [vmem:[#allocation9 + $0xd0] sm:$0xff] }
  0x8c   : > { %845 = vmatpush.msra.mxu0 %v811_v45  ;;  %945 = vmatpush.msra.mxu3 %v909_v21  ;;  %v994_v27 = vld [vmem:[#allocation9 + $0x20] sm:$0xff]  ;;  %v1088_v28 = vld [vmem:[#allocation9 + $0x150] sm:$0xff]  ;;  %v907_v29 = vld [vmem:[#allocation10 + $0x58] sm:$0xff] }
  0x8d   : > { %868 = vmatpush.msra.mxu1 %v794_v46  ;;  %933 = vmatpush.msra.mxu2 %v882_v44  ;;  %v1016_v30 = vld [vmem:[#allocation9 + $0xc8] sm:$0xff]  ;;  %v906_v33 = vld [vmem:[#allocation10 + $0x50] sm:$0xff]  ;;  %v1015_v34 = vld [vmem:[#allocation9 + $0xc0] sm:$0xff] }
  0x8e   : > { %846 = vmatpush.msra.mxu0 %v810_v48  ;;  %946 = vmatpush.msra.mxu3 %v908_v25  ;;  %v1087_v32 = vld [vmem:[#allocation9 + $0x148] sm:$0xff]  ;;  %v992_v35 = vld [vmem:[#allocation9 + $0x10] sm:$0xff]  ;;  %v1086_v36 = vld [vmem:[#allocation9 + $0x140] sm:$0xff] }
  0x8f   : > { %869 = vmatpush.msra.mxu1 %v793_v49  ;;  %934 = vmatpush.msra.mxu2 %v881_v52  ;;  %v905_v37 = vld [vmem:[#allocation10 + $0x48] sm:$0xff]  ;;  %v1014_v38 = vld [vmem:[#allocation9 + $0xb8] sm:$0xff]  ;;  %v904_v41 = vld [vmem:[#allocation10 + $0x40] sm:$0xff] }
  0x90   : > { %847 = vmatpush.msra.mxu0 %v809_v53  ;;  %947 = vmatpush.msra.mxu3 %v907_v29  ;;  %v1085_v40 = vld [vmem:[#allocation9 + $0x138] sm:$0xff]  ;;  %v1013_v42 = vld [vmem:[#allocation9 + $0xb0] sm:$0xff]  ;;  %v990_v43 = vld [vmem:[#allocation9] sm:$0xff] }
  0x91   : > { %870 = vmatpush.msra.mxu1 %v792_v56  ;;  %935 = vmatpush.msra.mxu2 %v880_v57  ;;  %v1084_v44 = vld [vmem:[#allocation9 + $0x130] sm:$0xff]  ;;  %v903_v45 = vld [vmem:[#allocation10 + $0x38] sm:$0xff]  ;;  %v1012_v46 = vld [vmem:[#allocation9 + $0xa8] sm:$0xff] }
  0x92   : > { %848 = vmatpush.msra.mxu0 %v808_v58  ;;  %936 = vmatmul.f32.vlgmr.msra.gmra.mxu2 %v2940_v59  ;;  %v1083_v47 = vld [vmem:[#allocation9 + $0x128] sm:$0xff]  ;;  %v902_v48 = vld [vmem:[#allocation10 + $0x30] sm:$0xff]  ;;  %v1011_v49 = vld [vmem:[#allocation9 + $0xa0] sm:$0xff] }
  0x93   : > { %871 = vmatpush.msra.mxu1 %v791_v60  ;;  %849 = vmatmul.f32.vlgmr.msra.gmra.mxu0 %v828_v61  ;;  %v1082_v50 = vld [vmem:[#allocation9 + $0x120] sm:$0xff]  ;;  %v901_v51 = vld [vmem:[#allocation10 + $0x28] sm:$0xff]  ;;  %v1010_v52 = vld [vmem:[#allocation9 + $0x98] sm:$0xff] }
  0x94   : > { %2041 = vmatmul.msk.f32.vlgmr.msra.gmra.mxu1 %vm2944_vm3, %v2926_v31  ;;  %1031 = vmatpush.msrb.mxu0 %v1022_v0  ;;  %v993_v31 = vld [vmem:[#allocation9 + $0x18] sm:$0xff]  ;;  %v900_v54 = vld [vmem:[#allocation10 + $0x20] sm:$0xff]  ;;  %v1009_v55 = vld [vmem:[#allocation9 + $0x90] sm:$0xff] }
  0x95   : > { %1054 = vmatpush.msrb.mxu1 %v1005_v63  ;;  %1101 = vmatpush.msrb.mxu2 %v1093_v1  ;;  %v1081_v53 = vld [vmem:[#allocation9 + $0x118] sm:$0xff]  ;;  %v1080_v56 = vld [vmem:[#allocation9 + $0x110] sm:$0xff]  ;;  %v1008_v58 = vld [vmem:[#allocation9 + $0x88] sm:$0xff] }
  0x96   : > { %1032 = vmatpush.msrb.mxu0 %v1021_v4  ;;  %948 = vmatpush.msra.mxu3 %v906_v33  ;;  %v899_v57 = vld [vmem:[#allocation10 + $0x18] sm:$0xff]  ;;  %v1079_v60 = vld [vmem:[#allocation9 + $0x108] sm:$0xff]  ;;  %v898_v61 = vld [vmem:[#allocation10 + $0x10] sm:$0xff] }
  0x97   : > { %1055 = vmatpush.msrb.mxu1 %v1004_v3  ;;  %1102 = vmatpush.msrb.mxu2 %v1092_v6  ;;  %v1007_v63 = vld [vmem:[#allocation9 + $0x80] sm:$0xff]  ;;  %v897_v1 = vld [vmem:[#allocation10 + $0x8] sm:$0xff]  ;;  %vm2983_vm5 = vmneg %vm1140_vm4 }
  0x98   : > { %1033 = vmatpush.msrb.mxu0 %v1020_v8  ;;  %949 = vmatpush.msra.mxu3 %v905_v37  ;;  %v1078_v0 = vld [vmem:[#allocation9 + $0x100] sm:$0xff]  ;;  %v1156_v37 = vld [vmem:[#allocation12 + $0x48] sm:$0xff] }
  0x99   : > { %1056 = vmatpush.msrb.mxu1 %v1003_v7  ;;  %1103 = vmatpush.msrb.mxu2 %v1091_v9  ;;  %v896_v2 = vld [vmem:[#allocation10] sm:$0xff] }
  0x9a   : > { %939 = vmatmul.f32.gmra.mxu2 %v2955_v10  ;;  %1034 = vmatpush.msrb.mxu0 %v1019_v14  ;;  %v2194_v6 = vld [vmem:[%s3143_s30] ss:$0 sm:$0xff] }
  0x9b   : > { %1057 = vmatpush.msrb.mxu1 %v1002_v11  ;;  %852 = vmatmul.f32.gmra.mxu0 %v830_v12  ;;  %v1159_v33 = vld [vmem:[#allocation12 + $0x60] sm:$0xff] }
  0x9c   : > { %875 = vmatmul.f32.gmra.mxu1 %v2933_v39  ;;  %1104 = vmatpush.msrb.mxu2 %v1090_v15  ;;  %v991_v39 = vld [vmem:[#allocation9 + $0x8] sm:$0xff] }
  0x9d   : > { %1058 = vmatpush.msrb.mxu1 %v1001_v13  ;;  %1035 = vmatpush.msrb.mxu0 %v1018_v22 }
  0x9e   : > { %1105 = vmatpush.msrb.mxu2 %v1089_v24  ;;  %950 = vmatpush.msra.mxu3 %v904_v41  ;;  %v1249_v41 = vld [vmem:[#allocation12 + $0x170] sm:$0xff] }
  0x9f   : > { %1059 = vmatpush.msrb.mxu1 %v1000_v16  ;;  %1036 = vmatpush.msrb.mxu0 %v1017_v26 }
  0xa0   : > { %1106 = vmatpush.msrb.mxu2 %v1088_v28  ;;  %951 = vmatpush.msra.mxu3 %v903_v45  ;;  %v1176_v45 = vld [vmem:[#allocation12 + $0xe0] sm:$0xff] }
  0xa1   : > { %1060 = vmatpush.msrb.mxu1 %v999_v17  ;;  %1037 = vmatpush.msrb.mxu0 %v1016_v30  ;;  %v1162_v30 = vld [vmem:[#allocation12 + $0x78] sm:$0xff] }
  0xa2   : > { %1107 = vmatpush.msrb.mxu2 %v1087_v32  ;;  %952 = vmatpush.msra.mxu3 %v902_v48  ;;  %v1160_v32 = vld [vmem:[#allocation12 + $0x68] sm:$0xff]  ;;  %v1175_v48 = vld [vmem:[#allocation12 + $0xd8] sm:$0xff] }
  0xa3   : > { %1061 = vmatpush.msrb.mxu1 %v998_v18  ;;  %1038 = vmatpush.msrb.mxu0 %v1015_v34  ;;  %v1158_v34 = vld [vmem:[#allocation12 + $0x58] sm:$0xff] }
  0xa4   : > { %1108 = vmatpush.msrb.mxu2 %v1086_v36  ;;  %953 = vmatpush.msra.mxu3 %v901_v51  ;;  %v1179_v36 = vld [vmem:[#allocation12 + $0xf8] sm:$0xff]  ;;  %v1174_v51 = vld [vmem:[#allocation12 + $0xd0] sm:$0xff] }
  0xa5   : > { %1062 = vmatpush.msrb.mxu1 %v997_v19  ;;  %1039 = vmatpush.msrb.mxu0 %v1014_v38  ;;  %v1250_v38 = vld [vmem:[#allocation12 + $0x178] sm:$0xff] }
  0xa6   : > { %1109 = vmatpush.msrb.mxu2 %v1085_v40  ;;  %954 = vmatpush.msra.mxu3 %v900_v54  ;;  %v1155_v40 = vld [vmem:[#allocation12 + $0x40] sm:$0xff]  ;;  %v1173_v54 = vld [vmem:[#allocation12 + $0xc8] sm:$0xff] }
  0xa7   : > { %1063 = vmatpush.msrb.mxu1 %v996_v20  ;;  %1040 = vmatpush.msrb.mxu0 %v1013_v42  ;;  %v1177_v42 = vld [vmem:[#allocation12 + $0xe8] sm:$0xff] }
  0xa8   : > { %1110 = vmatpush.msrb.mxu2 %v1084_v44  ;;  %955 = vmatpush.msra.mxu3 %v899_v57  ;;  %v1248_v44 = vld [vmem:[#allocation12 + $0x168] sm:$0xff]  ;;  %v1172_v57 = vld [vmem:[#allocation12 + $0xc0] sm:$0xff] }
  0xa9   : > { %1064 = vmatpush.msrb.mxu1 %v995_v23  ;;  %1041 = vmatpush.msrb.mxu0 %v1012_v46  ;;  %v1153_v46 = vld [vmem:[#allocation12 + $0x30] sm:$0xff] }
  0xaa   : > { %1111 = vmatpush.msrb.mxu2 %v1083_v47  ;;  %956 = vmatpush.msra.mxu3 %v898_v61  ;;  %v1247_v47 = vld [vmem:[#allocation12 + $0x160] sm:$0xff]  ;;  %v1171_v61 = vld [vmem:[#allocation12 + $0xb8] sm:$0xff] }
  0xab   : > { %1065 = vmatpush.msrb.mxu1 %v994_v27  ;;  %1042 = vmatpush.msrb.mxu0 %v1011_v49  ;;  %v1152_v49 = vld [vmem:[#allocation12 + $0x28] sm:$0xff] }
  0xac   : > { %1112 = vmatpush.msrb.mxu2 %v1082_v50  ;;  %957 = vmatpush.msra.mxu3 %v897_v1  ;;  %v1246_v50 = vld [vmem:[#allocation12 + $0x158] sm:$0xff]  ;;  %v1170_v1 = vld [vmem:[#allocation12 + $0xb0] sm:$0xff] }
  0xad   : > { %1066 = vmatpush.msrb.mxu1 %v993_v31  ;;  %1043 = vmatpush.msrb.mxu0 %v1010_v52  ;;  %v1161_v31 = vld [vmem:[#allocation12 + $0x70] sm:$0xff]  ;;  %v1151_v52 = vld [vmem:[#allocation12 + $0x20] sm:$0xff] }
  0xae   : > { %1113 = vmatpush.msrb.mxu2 %v1081_v53  ;;  %958 = vmatpush.msra.mxu3 %v896_v2  ;;  %v1245_v53 = vld [vmem:[#allocation12 + $0x150] sm:$0xff]  ;;  %v1147_v2 = vld [vmem:[#allocation12] sm:$0xff] }
  0xaf   : > { %1067 = vmatpush.msrb.mxu1 %v992_v35  ;;  %1044 = vmatpush.msrb.mxu0 %v1009_v55  ;;  %v1157_v35 = vld [vmem:[#allocation12 + $0x50] sm:$0xff]  ;;  %v1150_v55 = vld [vmem:[#allocation12 + $0x18] sm:$0xff] }
  0xb0   : > { %1114 = vmatpush.msrb.mxu2 %v1080_v56  ;;  %959 = vmatmul.f32.vlgmr.msra.gmra.mxu3 %v2940_v59  ;;  %v1244_v56 = vld [vmem:[#allocation12 + $0x148] sm:$0xff] }
  0xb1   : > { %1068 = vmatpush.msrb.mxu1 %v991_v39  ;;  %1045 = vmatpush.msrb.mxu0 %v1008_v58  ;;  %v1178_v39 = vld [vmem:[#allocation12 + $0xf0] sm:$0xff] }
  0xb2   : > { %1115 = vmatpush.msrb.mxu2 %v1079_v60  ;;  %1188 = vmatpush.msrb.mxu3 %v1179_v36  ;;  %v1149_v58 = vld [vmem:[#allocation12 + $0x10] sm:$0xff]  ;;  %v1243_v60 = vld [vmem:[#allocation12 + $0x140] sm:$0xff] }
  0xb3   : > { %1069 = vmatpush.msrb.mxu1 %v990_v43  ;;  %1046 = vmatpush.msrb.mxu0 %v1007_v63  ;;  %v1154_v43 = vld [vmem:[#allocation12 + $0x38] sm:$0xff]  ;;  %v1148_v63 = vld [vmem:[#allocation12 + $0x8] sm:$0xff] }
  0xb4   : > { %1116 = vmatpush.msrb.mxu2 %v1078_v0  ;;  %1189 = vmatpush.msrb.mxu3 %v1178_v39  ;;  %v1242_v0 = vld [vmem:[#allocation12 + $0x138] sm:$0xff] }
  0xb5   : > { %1211 = vmatpush.msra.mxu0 %v1162_v30  ;;  %1258 = vmatpush.msra.mxu1 %v1250_v38 }
  0xb6   : > { %1190 = vmatpush.msrb.mxu3 %v1177_v42 }
  0xb7   : > { %1212 = vmatpush.msra.mxu0 %v1161_v31  ;;  %1259 = vmatpush.msra.mxu1 %v1249_v41 }
  0xb8   : > { %962 = vmatmul.f32.gmra.mxu3 %v2955_v10 }
  0xb9   : > { %1213 = vmatpush.msra.mxu0 %v1160_v32  ;;  %1260 = vmatpush.msra.mxu1 %v1248_v44 }
  0xba   : > { %1191 = vmatpush.msrb.mxu3 %v1176_v45 }
  0xbb   : > { %1214 = vmatpush.msra.mxu0 %v1159_v33  ;;  %1261 = vmatpush.msra.mxu1 %v1247_v47 }
  0xbc   : > { %1192 = vmatpush.msrb.mxu3 %v1175_v48 }
  0xbd   : > { %1215 = vmatpush.msra.mxu0 %v1158_v34  ;;  %1262 = vmatpush.msra.mxu1 %v1246_v50 }
  0xbe   : > { %1193 = vmatpush.msrb.mxu3 %v1174_v51 }
  0xbf   : > { %1216 = vmatpush.msra.mxu0 %v1157_v35  ;;  %1263 = vmatpush.msra.mxu1 %v1245_v53 }
  0xc0   : > { %1194 = vmatpush.msrb.mxu3 %v1173_v54  ;;  %v1313_v54 = vld [vmem:[#allocation13 + $0x70] sm:$0xff] }
  0xc1   : > { %1217 = vmatpush.msra.mxu0 %v1156_v37  ;;  %1264 = vmatpush.msra.mxu1 %v1244_v56  ;;  %v1311_v56 = vld [vmem:[#allocation13 + $0x60] sm:$0xff] }
  0xc2   : > { %1195 = vmatpush.msrb.mxu3 %v1172_v57  ;;  %v1310_v57 = vld [vmem:[#allocation13 + $0x58] sm:$0xff] }
  0xc3   : > { %1218 = vmatpush.msra.mxu0 %v1155_v40  ;;  %1265 = vmatpush.msra.mxu1 %v1243_v60  ;;  %v1331_v60 = vld [vmem:[#allocation13 + $0xf8] sm:$0xff] }
  0xc4   : > { %1196 = vmatpush.msrb.mxu3 %v1171_v61  ;;  %v1308_v61 = vld [vmem:[#allocation13 + $0x48] sm:$0xff]  ;;  %1340 = vmatpush.msra.mxu2 %v1331_v60  ;;  %v1478_v60 = vld [vmem:[#allocation15 + $0xf0] sm:$0xff] }
  0xc5   : > { %1219 = vmatpush.msra.mxu0 %v1154_v43  ;;  %1266 = vmatpush.msra.mxu1 %v1242_v0  ;;  %v1330_v0 = vld [vmem:[#allocation13 + $0xf0] sm:$0xff] }
  0xc6   : > { %1197 = vmatpush.msrb.mxu3 %v1170_v1  ;;  %v1307_v1 = vld [vmem:[#allocation13 + $0x40] sm:$0xff]  ;;  %1341 = vmatpush.msra.mxu2 %v1330_v0 }
  0xc7   : > { %1220 = vmatpush.msra.mxu0 %v1153_v46 }
  0xc9   : > { %1221 = vmatpush.msra.mxu0 %v1152_v49 }
  0xcb   : > { %1222 = vmatpush.msra.mxu0 %v1151_v52 }
  0xcd   : > { %1223 = vmatpush.msra.mxu0 %v1150_v55  ;;  %v1312_v55 = vld [vmem:[#allocation13 + $0x68] sm:$0xff] }
  0xcf   : > { %1224 = vmatpush.msra.mxu0 %v1149_v58  ;;  %v1309_v58 = vld [vmem:[#allocation13 + $0x50] sm:$0xff] }
  0xd1   : > { %1225 = vmatpush.msra.mxu0 %v1148_v63  ;;  %v1402_v63 = vld [vmem:[#allocation13 + $0x178] sm:$0xff] }
  0xd3   : > { %1226 = vmatpush.msra.mxu0 %v1147_v2  ;;  %v1401_v2 = vld [vmem:[#allocation13 + $0x170] sm:$0xff] }
 0x110   : > { %v850_v3 = vpop.f32.mrf.mxu0 }
 0x111   : > { %v873_v4 = vpop.f32.mrf.mxu1 }
 0x112   : > { %v874_v5 = vadd.f32 %v873_v4, %v850_v3  ;;  %v1241_v3 = vld [vmem:[#allocation12 + $0x130] sm:$0xff]  ;;  %v1169_v4 = vld [vmem:[#allocation12 + $0xa8] sm:$0xff] }
 0x113   : > { %1267 = vmatpush.msra.mxu1 %v1241_v3  ;;  %1198 = vmatpush.msrb.mxu3 %v1169_v4  ;;  %v1329_v3 = vld [vmem:[#allocation13 + $0xe8] sm:$0xff]  ;;  %v1306_v4 = vld [vmem:[#allocation13 + $0x38] sm:$0xff] }
 0x114   : > { %1342 = vmatpush.msra.mxu2 %v1329_v3 }
 0x115   : > { %v937_v7 = vpop.f32.mrf.mxu2 }
 0x116   : > { %v972_v8 = vadd.f32 %v937_v7, %v874_v5  ;;  %v1240_v5 = vld [vmem:[#allocation12 + $0x128] sm:$0xff]  ;;  %v1239_v7 = vld [vmem:[#allocation12 + $0x120] sm:$0xff] }
 0x117   : > { %1268 = vmatpush.msra.mxu1 %v1240_v5  ;;  %v1400_v5 = vld [vmem:[#allocation13 + $0x168] sm:$0xff] }
 0x118   : > { %v978_v9 = vadd.f32 %v2194_v6, %v972_v8  ;;  %v853_v11 = vpop.f32.mrf.mxu0  ;;  %v1167_v8 = vld [vmem:[#allocation12 + $0x98] sm:$0xff] }
 0x119   : > { %v876_v12 = vpop.f32.mrf.mxu1  ;;  %1269 = vmatpush.msra.mxu1 %v1239_v7  ;;  %v1305_v7 = vld [vmem:[#allocation13 + $0x30] sm:$0xff] }
 0x11a   : > { %v980_v13 = vmax.f32 %v978_v9, 0.0  ;;  %v877_v14 = vadd.f32 %v876_v12, %v853_v11  ;;  %v1238_v9 = vld [vmem:[#allocation12 + $0x118] sm:$0xff]  ;;  %v1166_v11 = vld [vmem:[#allocation12 + $0x90] sm:$0xff] }
 0x11b   : > { %1270 = vmatpush.msra.mxu1 %v1238_v9  ;;  %v1237_v12 = vld [vmem:[#allocation12 + $0x110] sm:$0xff]  ;;  %v1327_v9 = vld [vmem:[#allocation13 + $0xd8] sm:$0xff] }
 0x11c   : > { %v984_v15 = vrot.slane %v980_v13, 6  ;;  %v1165_v13 = vld [vmem:[#allocation12 + $0x88] sm:$0xff] }
 0x11d   : > { %v940_v16 = vpop.f32.mrf.mxu2  ;;  %1271 = vmatpush.msra.mxu1 %v1237_v12  ;;  %v1398_v12 = vld [vmem:[#allocation13 + $0x158] sm:$0xff] }
 0x11e   : > { %v973_v17 = vadd.f32 %v940_v16, %v877_v14  ;;  %2043 = vmatmul.msk.f32.vlgmr.msrb.gmra.mxu1 %vm2944_vm3, %v984_v15  ;;  %v989_v20 = vsel %vm784_vm0, 0.0, %v984_v15  ;;  %v1236_v14 = vld [vmem:[#allocation12 + $0x108] sm:$0xff]  ;;  %v1235_v16 = vld [vmem:[#allocation12 + $0x100] sm:$0xff] }
 0x11f   : > { %v1024_v23 = vrot.slane %v989_v20, 1  ;;  %v1094_v24 = vrot.slane %v989_v20, 2  ;;  %1272 = vmatpush.msra.mxu1 %v1236_v14  ;;  %v2195_v20 = vld [vmem:[%s3089_s5] ss:$0 sm:$0xff] }
 0x120   : > { %v979_v59 = vadd.f32 %v2194_v6, %v973_v17  ;;  %v1168_v6 = vld [vmem:[#allocation12 + $0xa0] sm:$0xff] }
 0x121   : > { %1199 = vmatpush.msrb.mxu3 %v1168_v6  ;;  %1273 = vmatpush.msra.mxu1 %v1235_v16  ;;  %v1328_v6 = vld [vmem:[#allocation13 + $0xe0] sm:$0xff]  ;;  %v1325_v16 = vld [vmem:[#allocation13 + $0xc8] sm:$0xff] }
 0x122   : > { %v981_v18 = vmax.f32 %v979_v59, 0.0  ;;  %1343 = vmatpush.msra.mxu2 %v1328_v6  ;;  %v1303_v14 = vld [vmem:[#allocation13 + $0x20] sm:$0xff]  ;;  %v1456_v6 = vld [vmem:[#allocation15 + $0x48] sm:$0xff] }
 0x123   : > { %1200 = vmatpush.msrb.mxu3 %v1167_v8  ;;  %v1399_v8 = vld [vmem:[#allocation13 + $0x160] sm:$0xff] }
 0x124   : > { %v985_v19 = vrot.slane %v981_v18, 6  ;;  %1344 = vmatpush.msra.mxu2 %v1327_v9 }
 0x125   : > { %1201 = vmatpush.msrb.mxu3 %v1166_v11  ;;  %v1304_v11 = vld [vmem:[#allocation13 + $0x28] sm:$0xff] }
 0x126   : > { %v986_v21 = vsel %vm784_vm0, %v984_v15, %v985_v19  ;;  %v1027_v62 = vrot.slane %v985_v19, 1  ;;  %v1097_v27 = vrot.slane %v985_v19, 2  ;;  %v1164_v15 = vld [vmem:[#allocation12 + $0x80] sm:$0xff] }
 0x127   : > { %v1025_v22 = vrot.slane %v986_v21, 1  ;;  %1073 = vmatmul.f32.gmra.mxu1 %v986_v21  ;;  %v1095_v10 = vrot.slane %v986_v21, 2  ;;  %1202 = vmatpush.msrb.mxu3 %v1165_v13  ;;  %v2196_v21 = vld [vmem:[%s3091_s7] ss:$0 sm:$0xff]  ;;  %v1326_v13 = vld [vmem:[#allocation13 + $0xd0] sm:$0xff] }
 0x128   : > { %1345 = vmatpush.msra.mxu2 %v1326_v13 }
 0x129   : > { %v1026_v25 = vsel %vm825_vm2, %v1024_v23, %v1025_v22  ;;  %v1096_v26 = vsel %vm912_vm1, %v1094_v24, %v1095_v10  ;;  %v1028_v28 = vsel %vm825_vm2, %v1025_v22, %v1027_v62  ;;  %v1098_v29 = vsel %vm912_vm1, %v1095_v10, %v1097_v27  ;;  %1203 = vmatpush.msrb.mxu3 %v1164_v15  ;;  %v1314_v23 = vld [vmem:[#allocation13 + $0x78] sm:$0xff]  ;;  %v1397_v15 = vld [vmem:[#allocation13 + $0x150] sm:$0xff] }
 0x12a   : > { %1047 = vmatmul.f32.vlgmr.msrb.gmra.mxu0 %v1026_v25  ;;  %1117 = vmatmul.f32.vlgmr.msrb.gmra.mxu2 %v1096_v26 }
 0x12b   : > { %1363 = vmatpush.msra.mxu3 %v1314_v23  ;;  %1410 = vmatpush.msrb.mxu0 %v1402_v63  ;;  %v1322_v23 = vld [vmem:[#allocation13 + $0xb0] sm:$0xff]  ;;  %v1458_v63 = vld [vmem:[#allocation15 + $0x58] sm:$0xff] }
 0x12c   : > { %1346 = vmatpush.msra.mxu2 %v1325_v16 }
 0x12d   : > { %1364 = vmatpush.msra.mxu3 %v1313_v54  ;;  %1411 = vmatpush.msrb.mxu0 %v1401_v2  ;;  %v1567_v54 = vld [vmem:[#allocation18 + $0x70] sm:$0xff] }
 0x12f   : > { %1365 = vmatpush.msra.mxu3 %v1312_v55  ;;  %1412 = vmatpush.msrb.mxu0 %v1400_v5  ;;  %v1479_v55 = vld [vmem:[#allocation15 + $0xf8] sm:$0xff] }
 0x130   : > { %1490 = vmatpush.msrb.mxu1 %v1479_v55  ;;  %v1542_v55 = vld [vmem:[#allocation15 + $0x128] sm:$0xff] }
 0x131   : > { %1366 = vmatpush.msra.mxu3 %v1311_v56  ;;  %1413 = vmatpush.msrb.mxu0 %v1399_v8 }
 0x132   : > { %1050 = vmatmul.f32.gmra.mxu0 %v1028_v28  ;;  %1120 = vmatmul.f32.gmra.mxu2 %v1098_v29 }
 0x133   : > { %v960_v18 = vpop.f32.mrf.mxu3  ;;  %1367 = vmatpush.msra.mxu3 %v1310_v57  ;;  %1414 = vmatpush.msrb.mxu0 %v1398_v12  ;;  %v1550_v57 = vld [vmem:[#allocation15 + $0x168] sm:$0xff] }
 0x134   : > { %v970_v25 = vadd.f32 %v2196_v21, %v960_v18  ;;  %v1324_v18 = vld [vmem:[#allocation13 + $0xc0] sm:$0xff]  ;;  %1491 = vmatpush.msrb.mxu1 %v1478_v60 }
 0x135   : > { %1368 = vmatpush.msra.mxu3 %v1309_v58  ;;  %1415 = vmatpush.msrb.mxu0 %v1397_v15  ;;  %v1566_v58 = vld [vmem:[#allocation18 + $0x68] sm:$0xff]  ;;  %v1541_v60 = vld [vmem:[#allocation15 + $0x120] sm:$0xff] }
 0x136   : > { %1347 = vmatpush.msra.mxu2 %v1324_v18 }
 0x137   : > { %1369 = vmatpush.msra.mxu3 %v1308_v61 }
 0x139   : > { %1370 = vmatpush.msra.mxu3 %v1307_v1  ;;  %v1457_v1 = vld [vmem:[#allocation15 + $0x50] sm:$0xff] }
 0x13b   : > { %v963_v31 = vpop.f32.mrf.mxu3  ;;  %1371 = vmatpush.msra.mxu3 %v1306_v4 }
 0x13c   : > { %v971_v37 = vadd.f32 %v2196_v21, %v963_v31  ;;  %v1323_v21 = vld [vmem:[#allocation13 + $0xb8] sm:$0xff] }
 0x13d   : > { %1372 = vmatpush.msra.mxu3 %v1305_v7  ;;  %1348 = vmatpush.msra.mxu2 %v1323_v21  ;;  %v1390_v31 = vld [vmem:[#allocation13 + $0x118] sm:$0xff] }
 0x13f   : > { %1373 = vmatpush.msra.mxu3 %v1304_v11  ;;  %1349 = vmatpush.msra.mxu2 %v1322_v23  ;;  %v1549_v23 = vld [vmem:[#allocation15 + $0x160] sm:$0xff] }
 0x141   : > { %1374 = vmatpush.msra.mxu3 %v1303_v14 }
 0x19b   : > { %v1071_v59 = vpop.f32.mrf.mxu1 }
 0x1a4   : > { %v1074_v27 = vpop.f32.mrf.mxu1 }
 0x1a7   : > { %v1048_v17 = vpop.f32.mrf.mxu0 }
 0x1a8   : > { %v1072_v19 = vadd.f32 %v1071_v59, %v1048_v17  ;;  %v1302_v17 = vld [vmem:[#allocation13 + $0x18] sm:$0xff]  ;;  %v1396_v59 = vld [vmem:[#allocation13 + $0x148] sm:$0xff] }
 0x1a9   : > { %1375 = vmatpush.msra.mxu3 %v1302_v17  ;;  %1416 = vmatpush.msrb.mxu0 %v1396_v59 }
 0x1ad   : > { %v1118_v22 = vpop.f32.mrf.mxu2 }
 0x1ae   : > { %v1124_v10 = vadd.f32 %v1118_v22, %v1072_v19  ;;  %v1301_v19 = vld [vmem:[#allocation13 + $0x10] sm:$0xff]  ;;  %v1300_v22 = vld [vmem:[#allocation13 + $0x8] sm:$0xff] }
 0x1af   : > { %v1051_v26 = vpop.f32.mrf.mxu0  ;;  %1376 = vmatpush.msra.mxu3 %v1301_v19 }
 0x1b0   : > { %v1130_v24 = vadd.f32 %v2195_v20, %v1124_v10  ;;  %v1075_v28 = vadd.f32 %v1074_v27, %v1051_v26  ;;  %v1394_v10 = vld [vmem:[#allocation13 + $0x138] sm:$0xff]  ;;  %v1321_v26 = vld [vmem:[#allocation13 + $0xa8] sm:$0xff]  ;;  %v1320_v27 = vld [vmem:[#allocation13 + $0xa0] sm:$0xff] }
 0x1b1   : > { %1377 = vmatpush.msra.mxu3 %v1300_v22  ;;  %1350 = vmatpush.msra.mxu2 %v1321_v26  ;;  %v1454_v26 = vld [vmem:[#allocation15 + $0x38] sm:$0xff] }
 0x1b2   : > { %v1132_v62 = vmax.f32 %v1130_v24, 0.0  ;;  %v1299_v24 = vld [vmem:[#allocation13] sm:$0xff] }
 0x1b3   : > { %1378 = vmatpush.msra.mxu3 %v1299_v24  ;;  %1351 = vmatpush.msra.mxu2 %v1320_v27  ;;  %v1565_v24 = vld [vmem:[#allocation18 + $0x60] sm:$0xff]  ;;  %v1564_v27 = vld [vmem:[#allocation18 + $0x58] sm:$0xff] }
 0x1b4   : > { %v2979_v29 = vadd.f32 %v1132_v62, %v970_v25  ;;  %v1393_v25 = vld [vmem:[#allocation13 + $0x130] sm:$0xff]  ;;  %v1392_v62 = vld [vmem:[#allocation13 + $0x128] sm:$0xff] }
 0x1b5   : > { %v1121_v30 = vpop.f32.mrf.mxu2 }
 0x1b6   : > { %v1136_v32 = vmax.f32 %v2979_v29, 0.0  ;;  %v1125_v33 = vadd.f32 %v1121_v30, %v1075_v28  ;;  %v1391_v28 = vld [vmem:[#allocation13 + $0x120] sm:$0xff]  ;;  %v1319_v30 = vld [vmem:[#allocation13 + $0x98] sm:$0xff] }
 0x1b7   : > { %1352 = vmatpush.msra.mxu2 %v1319_v30  ;;  %v1453_v30 = vld [vmem:[#allocation15 + $0x30] sm:$0xff] }
 0x1b8   : > { %v1141_v35 = vrot.slane %v1136_v32, 4  ;;  %v1131_v36 = vadd.f32 %v2195_v20, %v1125_v33  ;;  %v1395_v20 = vld [vmem:[#allocation13 + $0x140] sm:$0xff]  ;;  %v1318_v33 = vld [vmem:[#allocation13 + $0x90] sm:$0xff] }
 0x1b9   : > { %1417 = vmatpush.msrb.mxu0 %v1395_v20  ;;  %1353 = vmatpush.msra.mxu2 %v1318_v33  ;;  %v1563_v33 = vld [vmem:[#allocation18 + $0x50] sm:$0xff] }
 0x1ba   : > { %v1133_v38 = vmax.f32 %v1131_v36, 0.0  ;;  %2045 = vmatmul.msk.f32.vlgmr.msra.gmra.mxu0 %vm2983_vm5, %v1141_v35  ;;  %v1146_v42 = vsel %vm1140_vm4, 0.0, %v1141_v35  ;;  %v1317_v36 = vld [vmem:[#allocation13 + $0x88] sm:$0xff] }
 0x1bb   : > { %v1181_v46 = vrot.slane %v1146_v42, 2  ;;  %v1251_v47 = vrot.slane %v1146_v42, 4  ;;  %1418 = vmatpush.msrb.mxu0 %v1394_v10  ;;  %1354 = vmatpush.msra.mxu2 %v1317_v36  ;;  %v1455_v10 = vld [vmem:[#allocation15 + $0x40] sm:$0xff]  ;;  %v1452_v36 = vld [vmem:[#allocation15 + $0x28] sm:$0xff] }
 0x1bc   : > { %v2991_v39 = vadd.f32 %v1133_v38, %v971_v37  ;;  %v1388_v37 = vld [vmem:[#allocation13 + $0x108] sm:$0xff]  ;;  %v1316_v38 = vld [vmem:[#allocation13 + $0x80] sm:$0xff] }
 0x1bd   : > { %1419 = vmatpush.msrb.mxu0 %v1393_v25  ;;  %1355 = vmatpush.msra.mxu2 %v1316_v38  ;;  %v1477_v25 = vld [vmem:[#allocation15 + $0xe8] sm:$0xff] }
 0x1be   : > { %v1137_v40 = vmax.f32 %v2991_v39, 0.0  ;;  %1492 = vmatpush.msrb.mxu1 %v1477_v25  ;;  %v1562_v38 = vld [vmem:[#allocation18 + $0x48] sm:$0xff]  ;;  %v1660_v25 = vld [vmem:[#allocation16 + $0xe0] sm:$0xff] }
 0x1bf   : > { %1420 = vmatpush.msrb.mxu0 %v1392_v62  ;;  %v1548_v62 = vld [vmem:[#allocation15 + $0x158] sm:$0xff]  ;;  %v1632_v39 = vld [vmem:[#allocation16 + $0x8] sm:$0xff] }
 0x1c0   : > { %v1142_v41 = vrot.slane %v1137_v40, 4 }
 0x1c1   : > { %1421 = vmatpush.msrb.mxu0 %v1391_v28  ;;  %v1476_v28 = vld [vmem:[#allocation15 + $0xe0] sm:$0xff] }
 0x1c2   : > { %v1143_v43 = vsel %vm1140_vm4, %v1141_v35, %v1142_v41  ;;  %v1184_v50 = vrot.slane %v1142_v41, 2  ;;  %v1254_v51 = vrot.slane %v1142_v41, 4  ;;  %v1389_v35 = vld [vmem:[#allocation13 + $0x110] sm:$0xff]  ;;  %v1387_v41 = vld [vmem:[#allocation13 + $0x100] sm:$0xff]  ;;  %1493 = vmatpush.msrb.mxu1 %v1476_v28 }
 0x1c3   : > { %v1182_v44 = vrot.slane %v1143_v43, 2  ;;  %1230 = vmatmul.f32.gmra.mxu0 %v1143_v43  ;;  %v1252_v45 = vrot.slane %v1143_v43, 4  ;;  %v1462_v43 = vld [vmem:[#allocation15 + $0x78] sm:$0xff]  ;;  %v1641_v28 = vld [vmem:[#allocation16 + $0x50] sm:$0xff] }
 0x1c4   : > { %1422 = vmatpush.msrb.mxu0 %v1390_v31  ;;  %1513 = vmatpush.msrb.mxu2 %v1462_v43  ;;  %v1547_v31 = vld [vmem:[#allocation15 + $0x150] sm:$0xff]  ;;  %v1545_v43 = vld [vmem:[#allocation15 + $0x140] sm:$0xff] }
 0x1c5   : > { %v1183_v48 = vsel %vm912_vm1, %v1181_v46, %v1182_v44  ;;  %v1253_v49 = vsel %vm1140_vm4, %v1251_v47, %v1252_v45  ;;  %v1185_v52 = vsel %vm912_vm1, %v1182_v44, %v1184_v50  ;;  %v1255_v53 = vsel %vm1140_vm4, %v1252_v45, %v1254_v51  ;;  %v1461_v44 = vld [vmem:[#allocation15 + $0x70] sm:$0xff]  ;;  %v2197_v47 = vld [vmem:[%s3093_s9] ss:$0 sm:$0xff]  ;;  %v1460_v50 = vld [vmem:[#allocation15 + $0x68] sm:$0xff] }
 0x1c6   : > { %1204 = vmatmul.f32.vlgmr.msrb.gmra.mxu3 %v1183_v48  ;;  %1274 = vmatmul.f32.vlgmr.msra.gmra.mxu1 %v1253_v49  ;;  %v1552_v48 = vld [vmem:[#allocation15 + $0x178] sm:$0xff] }
 0x1c7   : > { %1423 = vmatpush.msrb.mxu0 %v1389_v35  ;;  %1569 = vmatpush.msrb.mxu3 %v1552_v48  ;;  %v1568_v51 = vld [vmem:[#allocation18 + $0x78] sm:$0xff] }
 0x1c8   : > { %1514 = vmatpush.msrb.mxu2 %v1461_v44  ;;  %v1475_v35 = vld [vmem:[#allocation15 + $0xd8] sm:$0xff]  ;;  %v1561_v44 = vld [vmem:[#allocation18 + $0x40] sm:$0xff] }
 0x1c9   : > { %1424 = vmatpush.msrb.mxu0 %v1388_v37  ;;  %1494 = vmatpush.msrb.mxu1 %v1475_v35  ;;  %v1546_v37 = vld [vmem:[#allocation15 + $0x148] sm:$0xff]  ;;  %v1560_v48 = vld [vmem:[#allocation18 + $0x38] sm:$0xff]  ;;  %v1729_v35 = vld [vmem:[#allocation16 + $0x150] sm:$0xff] }
 0x1ca   : > { %1515 = vmatpush.msrb.mxu2 %v1460_v50  ;;  %v1449_v50 = vld [vmem:[#allocation15 + $0x10] sm:$0xff] }
 0x1cb   : > { %1425 = vmatpush.msrb.mxu0 %v1387_v41  ;;  %v1474_v41 = vld [vmem:[#allocation15 + $0xd0] sm:$0xff] }
 0x1cc   : > { %1495 = vmatpush.msrb.mxu1 %v1474_v41  ;;  %v1728_v41 = vld [vmem:[#allocation16 + $0x148] sm:$0xff] }
 0x1cd   : > { %1592 = vmatpush.msra.mxu0 %v1568_v51  ;;  %v1543_v51 = vld [vmem:[#allocation15 + $0x130] sm:$0xff] }
 0x1ce   : > { %1207 = vmatmul.f32.gmra.mxu3 %v1185_v52  ;;  %1277 = vmatmul.f32.gmra.mxu1 %v1255_v53  ;;  %v1551_v52 = vld [vmem:[#allocation15 + $0x170] sm:$0xff]  ;;  %v1459_v53 = vld [vmem:[#allocation15 + $0x60] sm:$0xff] }
 0x1cf   : > { %1570 = vmatpush.msrb.mxu3 %v1551_v52  ;;  %1593 = vmatpush.msra.mxu0 %v1567_v54  ;;  %v1559_v52 = vld [vmem:[#allocation18 + $0x30] sm:$0xff]  ;;  %v1448_v54 = vld [vmem:[#allocation15 + $0x8] sm:$0xff] }
 0x1d0   : > { %1516 = vmatpush.msrb.mxu2 %v1459_v53  ;;  %v1471_v53 = vld [vmem:[#allocation15 + $0xb8] sm:$0xff] }
 0x1d1   : > { %1571 = vmatpush.msrb.mxu3 %v1550_v57  ;;  %1594 = vmatpush.msra.mxu0 %v1566_v58  ;;  %v1470_v57 = vld [vmem:[#allocation15 + $0xb0] sm:$0xff]  ;;  %v1447_v58 = vld [vmem:[#allocation15] sm:$0xff] }
 0x1d2   : > { %1517 = vmatpush.msrb.mxu2 %v1458_v63  ;;  %v1469_v63 = vld [vmem:[#allocation15 + $0xa8] sm:$0xff] }
 0x1d3   : > { %1572 = vmatpush.msrb.mxu3 %v1549_v23  ;;  %1595 = vmatpush.msra.mxu0 %v1565_v24  ;;  %v1642_v24 = vld [vmem:[#allocation16 + $0x58] sm:$0xff] }
 0x1d4   : > { %1518 = vmatpush.msrb.mxu2 %v1457_v1  ;;  %v1556_v1 = vld [vmem:[#allocation18 + $0x18] sm:$0xff] }
 0x1d5   : > { %1573 = vmatpush.msrb.mxu3 %v1548_v62  ;;  %1596 = vmatpush.msra.mxu0 %v1564_v27 }
 0x1d6   : > { %1519 = vmatpush.msrb.mxu2 %v1456_v6  ;;  %v1467_v6 = vld [vmem:[#allocation15 + $0x98] sm:$0xff] }
 0x1d7   : > { %1574 = vmatpush.msrb.mxu3 %v1547_v31  ;;  %1597 = vmatpush.msra.mxu0 %v1563_v33  ;;  %v2198_v33 = vld [vmem:[%s3095_s11] ss:$0 sm:$0xff] }
 0x1d8   : > { %1520 = vmatpush.msrb.mxu2 %v1455_v10  ;;  %v1731_v10 = vld [vmem:[#allocation16 + $0x160] sm:$0xff] }
 0x1d9   : > { %1575 = vmatpush.msrb.mxu3 %v1546_v37  ;;  %1598 = vmatpush.msra.mxu0 %v1562_v38  ;;  %v1658_v37 = vld [vmem:[#allocation16 + $0xd0] sm:$0xff] }
 0x1da   : > { %1521 = vmatpush.msrb.mxu2 %v1454_v26  ;;  %v1730_v26 = vld [vmem:[#allocation16 + $0x158] sm:$0xff] }
 0x1db   : > { %1576 = vmatpush.msrb.mxu3 %v1545_v43  ;;  %1599 = vmatpush.msra.mxu0 %v1561_v44  ;;  %v1657_v43 = vld [vmem:[#allocation16 + $0xc8] sm:$0xff] }
 0x1dc   : > { %1522 = vmatpush.msrb.mxu2 %v1453_v30  ;;  %v1659_v30 = vld [vmem:[#allocation16 + $0xd8] sm:$0xff] }
 0x1dd   : > { %1600 = vmatpush.msra.mxu0 %v1560_v48 }
 0x1de   : > { %1523 = vmatpush.msrb.mxu2 %v1452_v36  ;;  %v1640_v36 = vld [vmem:[#allocation16 + $0x48] sm:$0xff] }
 0x1df   : > { %1601 = vmatpush.msra.mxu0 %v1559_v52 }
 0x237   : > { %v1228_v42 = vpop.f32.mrf.mxu0 }
 0x240   : > { %v1231_v2 = vpop.f32.mrf.mxu0 }
 0x243   : > { %v1275_v45 = vpop.f32.mrf.mxu1 }
 0x249   : > { %v1205_v46 = vpop.f32.mrf.mxu3 }
 0x24a   : > { %v1229_v49 = vadd.f32 %v1228_v42, %v1205_v46  ;;  %v1451_v42 = vld [vmem:[#allocation15 + $0x20] sm:$0xff]  ;;  %v1450_v46 = vld [vmem:[#allocation15 + $0x18] sm:$0xff] }
 0x24b   : > { %v1278_v7 = vpop.f32.mrf.mxu1  ;;  %1524 = vmatpush.msrb.mxu2 %v1451_v42  ;;  %v1639_v42 = vld [vmem:[#allocation16 + $0x40] sm:$0xff] }
 0x24c   : > { %v1281_v56 = vadd.f32 %v1275_v45, %v1229_v49  ;;  %v1473_v45 = vld [vmem:[#allocation15 + $0xc8] sm:$0xff]  ;;  %v1472_v49 = vld [vmem:[#allocation15 + $0xc0] sm:$0xff] }
 0x24d   : > { %1496 = vmatpush.msrb.mxu1 %v1473_v45  ;;  %1525 = vmatpush.msrb.mxu2 %v1450_v46  ;;  %v1727_v45 = vld [vmem:[#allocation16 + $0x140] sm:$0xff]  ;;  %v1638_v46 = vld [vmem:[#allocation16 + $0x38] sm:$0xff] }
 0x24e   : > { %v1287_v61 = vadd.f32 %v2197_v47, %v1281_v56  ;;  %v1558_v56 = vld [vmem:[#allocation18 + $0x28] sm:$0xff] }
 0x24f   : > { %1497 = vmatpush.msrb.mxu1 %v1472_v49  ;;  %1526 = vmatpush.msrb.mxu2 %v1449_v50  ;;  %v1637_v50 = vld [vmem:[#allocation16 + $0x30] sm:$0xff] }
 0x250   : > { %v1289_v0 = vmax.f32 %v1287_v61, 0.0  ;;  %1602 = vmatpush.msra.mxu0 %v1558_v56  ;;  %v1557_v61 = vld [vmem:[#allocation18 + $0x20] sm:$0xff] }
 0x251   : > { %v1208_v3 = vpop.f32.mrf.mxu3  ;;  %1498 = vmatpush.msrb.mxu1 %v1471_v53  ;;  %1527 = vmatpush.msrb.mxu2 %v1448_v54 }
 0x252   : > { %v1293_v4 = vrot.slane %v1289_v0, 4  ;;  %v1232_v5 = vadd.f32 %v1231_v2, %v1208_v3  ;;  %1603 = vmatpush.msra.mxu0 %v1557_v61  ;;  %v1540_v0 = vld [vmem:[#allocation15 + $0x118] sm:$0xff]  ;;  %v2618_v2 = vmov 0.0   ;;  %v1468_v3 = vld [vmem:[#allocation15 + $0xa0] sm:$0xff] }
 0x253   : > { %1499 = vmatpush.msrb.mxu1 %v1470_v57  ;;  %1528 = vmatpush.msrb.mxu2 %v1447_v58  ;;  %v3020_v56 = vrot.slane %v2618_v2, 4  ;;  %v1636_v57 = vld [vmem:[#allocation16 + $0x28] sm:$0xff]  ;;  %v1635_v61 = vld [vmem:[#allocation16 + $0x20] sm:$0xff] }
 0x254   : > { %v1282_v8 = vadd.f32 %v1278_v7, %v1232_v5  ;;  %2047 = vmatmul.msk.f32.vlgmr.msra.gmra.mxu3 %vm2983_vm5, %v1293_v4  ;;  %v1298_v13 = vsel %vm1140_vm4, 0.0, %v1293_v4  ;;  %1604 = vmatpush.msra.mxu0 %v1556_v1  ;;  %v1555_v5 = vld [vmem:[#allocation18 + $0x10] sm:$0xff]  ;;  %v1538_v7 = vld [vmem:[#allocation15 + $0x108] sm:$0xff] }
 0x255   : > { %v1333_v17 = vrot.slane %v1298_v13, 2  ;;  %v1403_v59 = vrot.slane %v1298_v13, 4  ;;  %1500 = vmatpush.msrb.mxu1 %v1469_v63  ;;  %v1465_v13 = vld [vmem:[#allocation15 + $0x88] sm:$0xff] }
 0x256   : > { %v1288_v9 = vadd.f32 %v2197_v47, %v1282_v8  ;;  %v1544_v47 = vld [vmem:[#allocation15 + $0x138] sm:$0xff]  ;;  %1605 = vmatpush.msra.mxu0 %v1555_v5  ;;  %v1554_v8 = vld [vmem:[#allocation18 + $0x8] sm:$0xff] }
 0x257   : > { %1577 = vmatpush.msrb.mxu3 %v1544_v47  ;;  %1501 = vmatpush.msrb.mxu1 %v1468_v3  ;;  %v1726_v5 = vld [vmem:[#allocation16 + $0x138] sm:$0xff] }
 0x258   : > { %v1290_v11 = vmax.f32 %v1288_v9, 0.0  ;;  %v1466_v9 = vld [vmem:[#allocation15 + $0x90] sm:$0xff]  ;;  %1606 = vmatpush.msra.mxu0 %v1554_v8 }
 0x259   : > { %1578 = vmatpush.msrb.mxu3 %v1543_v51  ;;  %1502 = vmatpush.msrb.mxu1 %v1467_v6  ;;  %v1656_v6 = vld [vmem:[#allocation16 + $0xc0] sm:$0xff]  ;;  %v1725_v8 = vld [vmem:[#allocation16 + $0x130] sm:$0xff] }
 0x25a   : > { %v1294_v12 = vrot.slane %v1290_v11, 4  ;;  %v1537_v11 = vld [vmem:[#allocation15 + $0x100] sm:$0xff] }
 0x25b   : > { %1579 = vmatpush.msrb.mxu3 %v1542_v55  ;;  %1503 = vmatpush.msrb.mxu1 %v1466_v9  ;;  %v1655_v9 = vld [vmem:[#allocation16 + $0xb8] sm:$0xff] }
 0x25c   : > { %v1295_v14 = vsel %vm1140_vm4, %v1293_v4, %v1294_v12  ;;  %v1336_v34 = vrot.slane %v1294_v12, 2  ;;  %v1406_v20 = vrot.slane %v1294_v12, 4  ;;  %v1539_v4 = vld [vmem:[#allocation15 + $0x110] sm:$0xff]  ;;  %v1553_v12 = vld [vmem:[#allocation18] sm:$0xff] }
 0x25d   : > { %v1334_v15 = vrot.slane %v1295_v14, 2  ;;  %1382 = vmatmul.f32.gmra.mxu3 %v1295_v14  ;;  %v1404_v16 = vrot.slane %v1295_v14, 4  ;;  %1607 = vmatpush.msra.mxu0 %v1553_v12  ;;  %v1464_v14 = vld [vmem:[#allocation15 + $0x80] sm:$0xff] }
 0x25e   : > { %1580 = vmatpush.msrb.mxu3 %v1541_v60  ;;  %1504 = vmatpush.msrb.mxu1 %v1465_v13  ;;  %v1631_v12 = vld [vmem:[#allocation16] sm:$0xff] }
 0x25f   : > { %v1335_v18 = vsel %vm912_vm1, %v1333_v17, %v1334_v15  ;;  %v1405_v19 = vsel %vm1140_vm4, %v1403_v59, %v1404_v16  ;;  %v1337_v21 = vsel %vm912_vm1, %v1334_v15, %v1336_v34  ;;  %v1407_v22 = vsel %vm1140_vm4, %v1404_v16, %v1406_v20  ;;  %v1646_v15 = vld [vmem:[#allocation16 + $0x78] sm:$0xff]  ;;  %v1645_v16 = vld [vmem:[#allocation16 + $0x70] sm:$0xff]  ;;  %v1644_v59 = vld [vmem:[#allocation16 + $0x68] sm:$0xff] }
 0x260   : > { %1356 = vmatmul.f32.vlgmr.msra.gmra.mxu2 %v1335_v18  ;;  %1426 = vmatmul.f32.vlgmr.msrb.gmra.mxu0 %v1405_v19  ;;  %v1734_v17 = vld [vmem:[#allocation16 + $0x178] sm:$0xff]  ;;  %v1733_v18 = vld [vmem:[#allocation16 + $0x170] sm:$0xff]  ;;  %v1732_v34 = vld [vmem:[#allocation16 + $0x168] sm:$0xff] }
 0x261   : > { %1581 = vmatpush.msrb.mxu3 %v1540_v0  ;;  %1505 = vmatpush.msrb.mxu1 %v1464_v14  ;;  %v1663_v19 = vld [vmem:[#allocation16 + $0xf8] sm:$0xff]  ;;  %v1662_v20 = vld [vmem:[#allocation16 + $0xf0] sm:$0xff]  ;;  %v1723_v13 = vld [vmem:[#allocation16 + $0x120] sm:$0xff] }
 0x262   : > { %1695 = vmatpush.msra.mxu2 %v1646_v15  ;;  %v1653_v14 = vld [vmem:[#allocation16 + $0xa8] sm:$0xff]  ;;  %v1722_v15 = vld [vmem:[#allocation16 + $0x118] sm:$0xff] }
 0x263   : > { %1582 = vmatpush.msrb.mxu3 %v1539_v4  ;;  %1672 = vmatpush.msra.mxu1 %v1663_v19  ;;  %v1634_v4 = vld [vmem:[#allocation16 + $0x18] sm:$0xff]  ;;  %v1650_v19 = vld [vmem:[#allocation16 + $0x90] sm:$0xff] }
 0x264   : > { %1696 = vmatpush.msra.mxu2 %v1645_v16  ;;  %v1652_v16 = vld [vmem:[#allocation16 + $0xa0] sm:$0xff] }
 0x265   : > { %1583 = vmatpush.msrb.mxu3 %v1538_v7  ;;  %1673 = vmatpush.msra.mxu1 %v1662_v20  ;;  %v1633_v7 = vld [vmem:[#allocation16 + $0x10] sm:$0xff]  ;;  %v1649_v20 = vld [vmem:[#allocation16 + $0x88] sm:$0xff] }
 0x266   : > { %1697 = vmatpush.msra.mxu2 %v1644_v59  ;;  %v1651_v59 = vld [vmem:[#allocation16 + $0x98] sm:$0xff] }
 0x267   : > { %1584 = vmatpush.msrb.mxu3 %v1537_v11  ;;  %v1654_v11 = vld [vmem:[#allocation16 + $0xb0] sm:$0xff] }
 0x268   : > { %1359 = vmatmul.f32.gmra.mxu2 %v1337_v21  ;;  %1429 = vmatmul.f32.gmra.mxu0 %v1407_v22  ;;  %v1643_v21 = vld [vmem:[#allocation16 + $0x60] sm:$0xff]  ;;  %v1661_v22 = vld [vmem:[#allocation16 + $0xe8] sm:$0xff] }
 0x269   : > { %1735 = vmatpush.msra.mxu3 %v1734_v17  ;;  %1698 = vmatpush.msra.mxu2 %v1643_v21  ;;  %v1721_v17 = vld [vmem:[#allocation16 + $0x110] sm:$0xff]  ;;  %v1648_v21 = vld [vmem:[#allocation16 + $0x80] sm:$0xff] }
 0x26a   : > { %1674 = vmatpush.msra.mxu1 %v1661_v22 }
 0x26b   : > { %1736 = vmatpush.msra.mxu3 %v1733_v18  ;;  %1699 = vmatpush.msra.mxu2 %v1642_v24  ;;  %v1720_v18 = vld [vmem:[#allocation16 + $0x108] sm:$0xff]  ;;  %v2200_v24 = vld [vmem:[%s3146_s10] ss:$0 sm:$0xff] }
 0x26c   : > { %1675 = vmatpush.msra.mxu1 %v1660_v25 }
 0x26d   : > { %1737 = vmatpush.msra.mxu3 %v1732_v34  ;;  %1700 = vmatpush.msra.mxu2 %v1641_v28  ;;  %v1719_v34 = vld [vmem:[#allocation16 + $0x100] sm:$0xff] }
 0x26e   : > { %1676 = vmatpush.msra.mxu1 %v1659_v30 }
 0x26f   : > { %1738 = vmatpush.msra.mxu3 %v1731_v10  ;;  %1701 = vmatpush.msra.mxu2 %v1640_v36 }
 0x270   : > { %1529 = vmatmul.f32.vlgmr.msrb.gmra.mxu2 %v2618_v2  ;;  %1677 = vmatpush.msra.mxu1 %v1658_v37 }
 0x271   : > { %1739 = vmatpush.msra.mxu3 %v1730_v26  ;;  %1702 = vmatpush.msra.mxu2 %v1639_v42 }
 0x272   : > { %1678 = vmatpush.msra.mxu1 %v1657_v43 }
 0x273   : > { %1740 = vmatpush.msra.mxu3 %v1729_v35  ;;  %1703 = vmatpush.msra.mxu2 %v1638_v46  ;;  %v1824_v46 = vld [vmem:[#allocation19 + $0x68] sm:$0xff] }
 0x274   : > { %1679 = vmatpush.msra.mxu1 %v1656_v6  ;;  %v1772_v6 = vlaneseq }
 0x275   : > { %1741 = vmatpush.msra.mxu3 %v1728_v41  ;;  %1704 = vmatpush.msra.mxu2 %v1637_v50  ;;  %v1820_v50 = vld [vmem:[#allocation19 + $0x48] sm:$0xff] }
 0x276   : > { %1680 = vmatpush.msra.mxu1 %v1655_v9 }
 0x277   : > { %1742 = vmatpush.msra.mxu3 %v1727_v45  ;;  %1705 = vmatpush.msra.mxu2 %v1636_v57  ;;  %v1825_v45 = vld [vmem:[#allocation19 + $0x70] sm:$0xff]  ;;  %v1814_v57 = vld [vmem:[#allocation19 + $0x18] sm:$0xff] }
 0x278   : > { %1681 = vmatpush.msra.mxu1 %v1654_v11  ;;  %v1773_v11 = vshrl.u32 %v1772_v6, 7 }
 0x279   : > { %1706 = vmatpush.msra.mxu2 %v1635_v61  ;;  %1743 = vmatpush.msra.mxu3 %v1726_v5  ;;  %v1813_v61 = vld [vmem:[#allocation19 + $0x10] sm:$0xff] }
 0x27a   : > { %1682 = vmatpush.msra.mxu1 %v1653_v14 }
 0x27b   : > { %1707 = vmatpush.msra.mxu2 %v1634_v4  ;;  %1744 = vmatpush.msra.mxu3 %v1725_v8  ;;  %v1811_v4 = vld [vmem:[#allocation19] sm:$0xff] }
 0x27c   : > { %1683 = vmatpush.msra.mxu1 %v1652_v16  ;;  %v1774_v16 = vadd.s32 8, %v1773_v11 }
 0x27d   : > { %1708 = vmatpush.msra.mxu2 %v1633_v7  ;;  %v2199_v7 = vld [vmem:[%s3148_s28] ss:$0 sm:$0xff] }
 0x27e   : > { %1684 = vmatpush.msra.mxu1 %v1651_v59  ;;  %v1778_v59 = vstv %s3157_s8  ;;  %s3150_s8 = sld [smem:[#allocation43_spill]] }
 0x27f   : > { %1709 = vmatpush.msra.mxu2 %v1632_v39  ;;  %vm1779_vm6 = vcmp.lt.s32.totalorder %v1773_v11, %v1778_v59  ;;  %vm1780_vm7 = vcmp.lt.s32.totalorder %v1774_v16, %v1778_v59 }
 0x280   : > { %1685 = vmatpush.msra.mxu1 %v1650_v19 }
 0x281   : > { %1710 = vmatpush.msra.mxu2 %v1631_v12 }
 0x282   : > { %1686 = vmatpush.msra.mxu1 %v1649_v20 }
 0x284   : > { %1687 = vmatpush.msra.mxu1 %v1648_v21 }
 0x2d7   : > { %v1380_v23 = vpop.f32.mrf.mxu3 }
 0x2dd   : > { %v1427_v62 = vpop.f32.mrf.mxu0 }
 0x2e0   : > { %v1383_v48 = vpop.f32.mrf.mxu3 }
 0x2e3   : > { %v1357_v27 = vpop.f32.mrf.mxu2 }
 0x2e4   : > { %v1381_v31 = vadd.f32 %v1380_v23, %v1357_v27 }
 0x2e5   : > { %v1430_v53 = vpop.f32.mrf.mxu0 }
 0x2e6   : > { %v1433_v38 = vadd.f32 %v1427_v62, %v1381_v31 }
 0x2e8   : > { %v1439_v44 = vadd.f32 %v2198_v33, %v1433_v38 }
 0x2ea   : > { %v1441_v47 = vmax.f32 %v1439_v44, 0.0  ;;  %v1826_v44 = vld [vmem:[#allocation19 + $0x78] sm:$0xff] }
 0x2eb   : > { %v1360_v49 = vpop.f32.mrf.mxu2  ;;  %1828 = vmatpush.msrb.mxu0 %v1826_v44 }
 0x2ec   : > { %v1443_v51 = vadd.f32 %v1441_v47, %v1136_v32  ;;  %v1384_v52 = vadd.f32 %v1383_v48, %v1360_v49  ;;  %v1823_v47 = vld [vmem:[#allocation19 + $0x60] sm:$0xff]  ;;  %v1822_v48 = vld [vmem:[#allocation19 + $0x58] sm:$0xff]  ;;  %v1821_v49 = vld [vmem:[#allocation19 + $0x50] sm:$0xff] }
 0x2ed   : > { %1829 = vmatpush.msrb.mxu0 %v1825_v45 }
 0x2ee   : > { %v1434_v54 = vadd.f32 %v1430_v53, %v1384_v52  ;;  %v1445_v55 = vmax.f32 %v1443_v51, 0.0  ;;  %v1819_v51 = vld [vmem:[#allocation19 + $0x40] sm:$0xff]  ;;  %v1818_v52 = vld [vmem:[#allocation19 + $0x38] sm:$0xff]  ;;  %v1817_v53 = vld [vmem:[#allocation19 + $0x30] sm:$0xff] }
 0x2ef   : > { %1830 = vmatpush.msrb.mxu0 %v1824_v46 }
 0x2f0   : > { %v1440_v58 = vadd.f32 %v2198_v33, %v1434_v54  ;;  %1532 = vmatmul.f32.gmra.mxu2 %v1445_v55  ;;  %1585 = vmatmul.f32.vlgmr.msrb.gmra.mxu3 %v1445_v55  ;;  %v1484_v60 = vrot.slane %v1445_v55, 4  ;;  %v1816_v54 = vld [vmem:[#allocation19 + $0x28] sm:$0xff] }
 0x2f1   : > { %1608 = vmatmul.f32.vlgmr.msra.gmra.mxu0 %v1445_v55  ;;  %v1815_v55 = vld [vmem:[#allocation19 + $0x20] sm:$0xff] }
 0x2f2   : > { %v1442_v63 = vmax.f32 %v1440_v58, 0.0  ;;  %v1485_v29 = vsel %vm1140_vm4, %v3020_v56, %v1484_v60  ;;  %1831 = vmatpush.msrb.mxu0 %v1823_v47  ;;  %v1827_v47 = vld [vmem:[%s3150_s8] sm:$0x1] }
 0x2f3   : > { %1506 = vmatmul.f32.vlgmr.msrb.gmra.mxu1 %v1485_v29  ;;  %v1530_v22 = vpop.f32.mrf.mxu2  ;;  %v2201_v29 = vld [vmem:[%s3147_s19] ss:$0 sm:$0xff]  ;;  %s1850_s19 = scalar_lea.sflag [#allocation6], %s2894_s6 }
 0x2f4   : > { %v1444_v32 = vadd.f32 %v1442_v63, %v1137_v40  ;;  %v1724_v40 = vld [vmem:[#allocation16 + $0x128] sm:$0xff]  ;;  %1832 = vmatpush.msrb.mxu0 %v1822_v48 }
 0x2f5   : > { %1745 = vmatpush.msra.mxu3 %v1724_v40 }
 0x2f6   : > { %v1446_v0 = vmax.f32 %v1444_v32, 0.0  ;;  %1833 = vmatpush.msrb.mxu0 %v1821_v49 }
 0x2f7   : > { %1746 = vmatpush.msra.mxu3 %v1723_v13 }
 0x2f8   : > { %1588 = vmatmul.f32.gmra.mxu3 %v1446_v0  ;;  %v1486_v1 = vrot.slane %v1446_v0, 4  ;;  %1711 = vmatmul.f32.vlgmr.msra.gmra.mxu2 %v2618_v2 }
 0x2f9   : > { %1611 = vmatmul.f32.gmra.mxu0 %v1446_v0  ;;  %1747 = vmatpush.msra.mxu3 %v1722_v15  ;;  %v1812_v0 = vld [vmem:[#allocation19 + $0x8] sm:$0xff] }
 0x2fa   : > { %v1487_v3 = vsel %vm1140_vm4, %v1484_v60, %v1486_v1  ;;  %1834 = vmatpush.msrb.mxu0 %v1820_v50 }
 0x2fb   : > { %1509 = vmatmul.f32.gmra.mxu1 %v1487_v3  ;;  %1748 = vmatpush.msra.mxu3 %v1721_v17  ;;  %v1795_v3 = vstv %s1794_s17  ;;  %s779_s17 = scalar_lea.vmem [#allocation21], %s2894_s6 }
 0x2fc   : > { %1835 = vmatpush.msrb.mxu0 %v1819_v51  ;;  %2202 = vrcp.f32 %v1795_v3  ;;  %vm1801_vm8 = vweird.f32 %v1795_v3  ;;  %s1860_s30 = sshll.u32 %s779_s17, 4  ;;  %s1861_s30 = int_to_ptr.vmem [resolvable:$true] %s1860_s30 }
 0x2fd   : > { %1749 = vmatpush.msra.mxu3 %v1720_v18 }
 0x2fe   : > { %1836 = vmatpush.msrb.mxu0 %v1818_v52 }
 0x2ff   : > { %1750 = vmatpush.msra.mxu3 %v1719_v34 }
 0x300   : > { %1837 = vmatpush.msrb.mxu0 %v1817_v53 }
 0x302   : > { %1838 = vmatpush.msrb.mxu0 %v1816_v54  ;;  %v2203_v17 = vpop.eup %2202 }
 0x303   : > { %v1797_v21 = vmul.f32 %v2203_v17, %v1795_v3  ;;  %vm1802_vm9 = vweird.f32 %v2203_v17 }
 0x304   : > { %1839 = vmatpush.msrb.mxu0 %v1815_v55  ;;  %vm1803_vm10 = vmor %vm1801_vm8, %vm1802_vm9 }
 0x306   : > { %1840 = vmatpush.msrb.mxu0 %v1814_v57 }
 0x308   : > { %1841 = vmatpush.msrb.mxu0 %v1813_v61 }
 0x30a   : > { %1842 = vmatpush.msrb.mxu0 %v1812_v0 }
 0x30c   : > { %1843 = vmatpush.msrb.mxu0 %v1811_v4 }
 0x36e   : > { %v1609_v63 = vpop.f32.mrf.mxu0 }
 0x36f   : > { %v1619_v13 = vadd.f32 %v2199_v7, %v1609_v63 }
 0x370   : > { %v1507_v10 = vpop.f32.mrf.mxu1 }
 0x371   : > { %v1531_v23 = vadd.f32 %v1530_v22, %v1507_v10 }
 0x373   : > { %v1586_v25 = vpop.f32.mrf.mxu3  ;;  %v1533_v27 = vpop.f32.mrf.mxu2 }
 0x374   : > { %v1621_v26 = vadd.f32 %v1586_v25, %v1531_v23  ;;  %v2048_v23 = vsel %vm1779_vm6, 1.0, %v2618_v2 }
 0x376   : > { %v1627_v62 = vadd.f32 %v2200_v24, %v1621_v26  ;;  %v1612_v14 = vpop.f32.mrf.mxu0  ;;  %v1798_v26 = vsub.f32 1.0, %v1797_v21 }
 0x377   : > { %v1620_v34 = vadd.f32 %v2199_v7, %v1612_v14 }
 0x378   : > { %v1629_v28 = vmax.f32 %v1627_v62, 0.0  ;;  %v1510_v30 = vpop.f32.mrf.mxu1 }
 0x379   : > { %v1534_v31 = vadd.f32 %v1533_v27, %v1510_v30  ;;  %v1799_v30 = vmul.f32 %v2203_v17, %v1798_v26 }
 0x37a   : > { %v1666_v33 = vrot.slane %v1629_v28, 4  ;;  %1714 = vmatmul.f32.gmra.mxu2 %v1629_v28  ;;  %1751 = vmatmul.f32.vlgmr.msra.gmra.mxu3 %v1629_v28 }
 0x37b   : > { %v1589_v35 = vpop.f32.mrf.mxu3 }
 0x37c   : > { %v1622_v36 = vadd.f32 %v1589_v35, %v1534_v31  ;;  %v1667_v37 = vsel %vm1140_vm4, %v3020_v56, %v1666_v33  ;;  %v1712_v56 = vpop.f32.mrf.mxu2 }
 0x37d   : > { %1688 = vmatmul.f32.vlgmr.msra.gmra.mxu1 %v1667_v37  ;;  %v1805_v37 = vand.u32 2147483647, %v1795_v3 }
 0x37e   : > { %v1628_v38 = vadd.f32 %v2200_v24, %v1622_v36  ;;  %v2049_v24 = vsel %vm1780_vm7, 1.0, %v2618_v2  ;;  %v1800_v36 = vadd.f32 %v2203_v17, %v1799_v30 }
 0x37f   : > { %vm1806_vm11 = vcmp.eq.f32.partialorder %v1805_v37, 8.507059e+37 }
 0x380   : > { %v1630_v41 = vmax.f32 %v1628_v38, 0.0  ;;  %v1804_v2 = vsel %vm1803_vm10, %v2203_v17, %v1800_v36 }
 0x382   : > { %v1668_v42 = vrot.slane %v1630_v41, 4  ;;  %1754 = vmatmul.f32.gmra.mxu3 %v1630_v41 }
 0x384   : > { %v1669_v43 = vsel %vm1140_vm4, %v1666_v33, %v1668_v42  ;;  %v1807_v33 = vand.u32 2147483648, %v1795_v3 }
 0x385   : > { %1691 = vmatmul.f32.gmra.mxu1 %v1669_v43 }
 0x386   : > { %v1808_v41 = vor.u32 1.1754944e-38, %v1807_v33 }
 0x388   : > { %v1809_v44 = vsel %vm1806_vm11, %v1808_v41, %v1804_v2 }
 0x3fa   : > { %v1689_v58 = vpop.f32.mrf.mxu1 }
 0x3fb   : > { %v1713_v60 = vadd.f32 %v1712_v56, %v1689_v58 }
 0x3fd   : > { %v1752_v32 = vpop.f32.mrf.mxu3  ;;  %v1715_v8 = vpop.f32.mrf.mxu2 }
 0x3fe   : > { %v1758_v1 = vadd.f32 %v1752_v32, %v1713_v60 }
 0x400   : > { %v1764_v5 = vadd.f32 %v2201_v29, %v1758_v1 }
 0x402   : > { %v1692_v9 = vpop.f32.mrf.mxu1  ;;  %v1766_v40 = vmax.f32 %v1764_v5, 0.0 }
 0x403   : > { %v1716_v39 = vadd.f32 %v1715_v8, %v1692_v9 }
 0x404   : > { %v1768_v18 = vadd.f32 %v1766_v40, %v1619_v13 }
 0x405   : > { %v1755_v12 = vpop.f32.mrf.mxu3 }
 0x406   : > { %v1759_v15 = vadd.f32 %v1755_v12, %v1716_v39  ;;  %v1770_v22 = vmax.f32 %v1768_v18, 0.0 }
 0x408   : > { %v1765_v19 = vadd.f32 %v2201_v29, %v1759_v15  ;;  %v1785_v62 = vmul.f32 %v2048_v23, %v1770_v22 }
 0x40a   : > { %v1767_v20 = vmax.f32 %v1765_v19, 0.0 }
 0x40c   : > { %v1769_v10 = vadd.f32 %v1767_v20, %v1620_v34 }
 0x40e   : > { %v1771_v25 = vmax.f32 %v1769_v10, 0.0 }
 0x410   : > { %v1786_v27 = vmul.f32 %v2049_v24, %v1771_v25 }
 0x412   : > { %v1787_v28 = vadd.f32 %v1786_v27, %v1785_v62 }
 0x414   : > { %v1788_v31 = vrot.slane %v1787_v28, 4 }
 0x416   : > { %v1789_v35 = vadd.f32 %v1788_v31, %v1787_v28 }
 0x418   : > { %v1790_v38 = vrot.slane %v1789_v35, 2 }
 0x41a   : > { %v1791_v42 = vadd.f32 %v1790_v38, %v1789_v35 }
 0x41c   : > { %v1792_v43 = vrot.slane %v1791_v42, 1 }
 0x41e   : > { %v1793_v45 = vadd.f32 %v1792_v43, %v1791_v42 }
 0x420   : > { %v1810_v46 = vmul.f32 %v1809_v44, %v1793_v45 }
 0x422   : > { %1844 = vmatmul.f32.vlgmr.msrb.gmra.mxu0 %v1810_v46 }
 0x49f   : > { %v1845_v48 = vpop.f32.mrf.mxu0 }
 0x4a0   : > { %v1846_v49 = vadd.f32 %v1845_v48, %v1827_v47 }
 0x4a2   : > { %1848 = vst [vmem:[%s779_s17] sm:$0x1] %v1846_v49 }
 0x4a3   : > { %2543 = shalt.err (!%p2540_p10)
}
 0x4a4   : > { %2091 = dma.vmem_to_hbm [thread:$0]  (%p2860_p13), %s1861_s30, 16, %s1863_s24, %s1850_s19  }
 0x4a5 PF: > { %s1874_s6 = sand.u32 1, %s2592_s2   ;;  %p3151_p11 = scmp.ge.s32.totalorder %s2604_s26, 2 }
 0x4a6   : > { %s1875_s12 = scalar_lea.sflag [#allocation6], %s1874_s6 }
 0x4a7   : > { %p2126_p0 = pnand %p3151_p11, %p2865_p4 }
 0x4a9   : > { %p2127_p2 = pneg %p2126_p0 }
 0x4ab   : > { %2587 = dma.done.wait (%p2127_p2), %s1875_s12, 16  }
 0x4ac   : > { %2589 = vsyncadd (%p2127_p2), %s1875_s12, 4294967280  ;;  %p46_p6 = scmp.ge.s32.totalorder %s2840_s4, 4   ;;  %s3152_s2 = smov %s2596_s25 }
 0x4ad   : > { %s3153_s25 = smov %s2600_s3  ;;  %s3154_s3 = smov %s2852_s23 }
 0x4ae   : > { %s3155_s26 = smov %s2840_s4  ;;  %48 = sbr.rel (!%p46_p6) target bundleno = 37 (0x25), region = 189 }
 0x4b3   :  { %1880 = vsyncpa [#allocation5], 1 }
 0x4b4   :  { %1882 = vsyncpa [#allocation5 + $0x1], 1 }
 0x4b5   :  { %1883 = vsyncpa [#allocation8], 1 }
 0x4b6   :  { %1884 = vsyncpa [#allocation11], 1 }
 0x4b7   :  { %1885 = vsyncpa [#allocation14], 1 }
 0x4b8   :  { %1886 = vsyncpa [#allocation17], 1 }
 0x4b9   :  { %1887 = vsyncpa [#allocation20], 1 }
 0x4ba   :  { %1888 = vsyncpa [#allocation6], 1 }
 0x4bb   :  { %1890 = vsyncpa [#allocation6 + $0x1], 1 }

</bundles_post_ra>
